<compile_context>
chip_gen: v7x
topology: tpu7x:2x2x1
jax: 0.10.0
libtpu: 0.0.40
codegen_flags: <defaults>
</compile_context>

<pallas_src>
import math
from functools import partial

import jax
import jax.numpy as jnp
from jax import lax
from jax.experimental import pallas as pl
from jax.experimental.pallas import tpu as pltpu


_NEG_INF = -1e30  # large finite negative: robust vs. -inf (no exp(-inf+inf)=NaN)


# ------------------------------ VMEM budgeting -------------------------------

def _round_up(x, m):
    return (x + m - 1) // m * m


def _padded_bytes(shape, dtype):
    """Conservative VMEM footprint of one buffer with (8,128) tile padding."""
    if len(shape) == 1:
        padded = 8 * _round_up(shape[0], 128)
    else:
        lead = 1
        for d in shape[:-2]:
            lead *= int(d)
        padded = lead * _round_up(int(shape[-2]), 8) * _round_up(int(shape[-1]), 128)
    return padded * jnp.dtype(dtype).itemsize


def _vmem_limit(entries):
    """entries: iterable of (shape, dtype, n_buffers).  Returns a scoped-VMEM
    limit in bytes: generous headroom, floored at 32 MiB (lifts v5e's 16 MiB
    default), capped at 100 MiB."""
    est = sum(_padded_bytes(s, d) * n for s, d, n in entries)
    return int(min(max(2 * est + (8 << 20), 32 << 20), 100 << 20))


# --------------------------- tiled linear kernel ----------------------------

def _linear_split_kernel(x_ref, w_ref, b_ref, *o_refs, out_scales):
    # x: (TM, K), w: (K, N), b: (1, N); N split evenly across the outputs.
    # One dot per split keeps the live f32 intermediate at (TM, N/n_split)
    # and lets each split's store/DMA overlap the next MXU pass.
    x = x_ref[...]
    n_out = o_refs[0].shape[-1]
    for idx, o_ref in enumerate(o_refs):
        lo = idx * n_out
        acc = jnp.dot(x, w_ref[:, lo:lo + n_out],
                      preferred_element_type=jnp.float32)
        acc = acc + b_ref[:, lo:lo + n_out].astype(jnp.float32)
        if out_scales[idx] != 1.0:          # static fold (e.g. 1/sqrt(hd) on q)
            acc = acc * out_scales[idx]
        o_ref[...] = acc.astype(o_ref.dtype)


def linear(x2d, w, b, *, n_split=1, out_scales=None, block_m=256):
    """y = x2d @ w + b, tiled over rows; the N axis is optionally split into
    `n_split` separate output arrays (used to emit q, k, v without an XLA
    split/copy afterwards).  out_scales: per-split static scale folded into
    the store."""
    M, K = x2d.shape
    K2, N = w.shape
    assert K == K2 and N % n_split == 0
    assert block_m % 8 == 0
    n_out = N // n_split
    if out_scales is None:
        out_scales = (1.0,) * n_split
    assert len(out_scales) == n_split

    # (8,128) rule: tm is a multiple of 8, or equals the full M extent.
    tm = M if M <= block_m else block_m
    grid = (pl.cdiv(M, tm),)

    in_specs = [
        pl.BlockSpec((tm, K), lambda i: (i, 0)),     # streamed activation tile
        pl.BlockSpec((K, N), lambda i: (0, 0)),      # weight: resident, DMA'd once
        pl.BlockSpec((1, N), lambda i: (0, 0)),      # bias:   resident, DMA'd once
    ]
    out_spec = pl.BlockSpec((tm, n_out), lambda i: (i, 0))
    if n_split == 1:
        out_specs = out_spec
        out_shape = jax.ShapeDtypeStruct((M, n_out), x2d.dtype)
    else:
        out_specs = tuple(out_spec for _ in range(n_split))
        out_shape = tuple(jax.ShapeDtypeStruct((M, n_out), x2d.dtype)
                          for _ in range(n_split))

    vmem_limit = _vmem_limit([
        ((tm, K), x2d.dtype, 2),
        ((K, N), w.dtype, 2),
        ((1, N), b.dtype, 2),
        ((tm, n_out), x2d.dtype, 2 * n_split),
    ])

    return pl.pallas_call(
        partial(_linear_split_kernel, out_scales=tuple(out_scales)),
        grid=grid,
        in_specs=in_specs,
        out_specs=out_specs,
        out_shape=out_shape,
        compiler_params=pltpu.CompilerParams(
            dimension_semantics=("parallel",),
            vmem_limit_bytes=vmem_limit),
    )(x2d, w, b.reshape(1, N))


# ----------------------- flash-style causal attention -----------------------

def _flash_causal_kernel(b_tbl, q_tbl, k_tbl, last_tbl,      # scalar prefetch (SMEM)
                         q_ref, k_ref, v_ref, o_ref,          # VMEM tiles
                         m_sc, l_sc, acc_sc,                   # VMEM scratch
                         *, n_head, head_dim, block_q, block_k):
    # q_ref: (1, tq, C), k_ref/v_ref: (1, tk, C), o_ref: (1, tq, C)
    s_idx = pl.program_id(0)
    qi = q_tbl[s_idx]
    ki = k_tbl[s_idx]
    last_ki = last_tbl[s_idx]

    q_start = qi * block_q
    k_start = ki * block_k

    @pl.when(ki == 0)
    def _init():
        m_sc[...] = jnp.full_like(m_sc, _NEG_INF)
        l_sc[...] = jnp.zeros_like(l_sc)
        acc_sc[...] = jnp.zeros_like(acc_sc)

    # q already carries the 1/sqrt(head_dim) scale (folded into the projection).
    q_all = q_ref[0]
    k_all = k_ref[0]
    v_all = v_ref[0]
    # Contract head_dim of q with head_dim of k directly (no explicit k.T).
    dims = (((1,), (1,)), ((), ()))

    def _accumulate(masked):
        if masked:
            row = q_start + lax.broadcasted_iota(jnp.int32, (block_q, block_k), 0)
            col = k_start + lax.broadcasted_iota(jnp.int32, (block_q, block_k), 1)
            causal = col <= row
        for h in range(n_head):        # all heads per program -> lane-dense output
            sl = slice(h * head_dim, (h + 1) * head_dim)
            s = lax.dot_general(q_all[:, sl], k_all[:, sl], dims,
                                preferred_element_type=jnp.float32)   # (tq, tk)
            if masked:
                s = jnp.where(causal, s, _NEG_INF)
            m_prev = m_sc[:, h:h + 1]                                  # (tq, 1)
            m_new = jnp.maximum(m_prev, jnp.max(s, axis=-1, keepdims=True))
            alpha = jnp.exp(m_prev - m_new)
            p = jnp.exp(s - m_new)
            l_sc[:, h:h + 1] = alpha * l_sc[:, h:h + 1] + jnp.sum(
                p, axis=-1, keepdims=True)
            acc_sc[h] = alpha * acc_sc[h] + jnp.dot(
                p.astype(v_all.dtype), v_all[:, sl],
                preferred_element_type=jnp.float32)
            m_sc[:, h:h + 1] = m_new

    # The triangular step table only contains needed blocks; interior blocks
    # (fully below the diagonal) skip all mask construction / selects.
    interior = (k_start + (block_k - 1)) <= q_start

    @pl.when(interior)
    def _interior():
        _accumulate(masked=False)

    @pl.when(jnp.logical_not(interior))
    def _diagonal():
        _accumulate(masked=True)

    @pl.when(ki == last_ki)
    def _finalize():
        # Softmax denominator on the EUP (approx reciprocal), then a single
        # lane-dense (tq, C) store with all heads concatenated.
        outs = [acc_sc[h] * pl.reciprocal(l_sc[:, h:h + 1], approx=True)
                for h in range(n_head)]
        o_ref[0] = jnp.concatenate(outs, axis=-1).astype(o_ref.dtype)


def causal_attention(q, k, v, *, n_head, block_q=256, block_k=256):
    """q, k, v, out: (B, T, C) with heads packed along C (head-major).
    q is expected to already carry the 1/sqrt(head_dim) scale."""
    B, T, C = q.shape
    assert C % n_head == 0
    hd = C // n_head

    tq = min(block_q, T)
    tk = min(block_k, T)
    nq = pl.cdiv(T, tq)
    nk = pl.cdiv(T, tk)

    # Flat lower-triangular step table (built at trace time; shapes static).
    # For each (b, qi) the kv index ascends from 0, so the first processed
    # block always contains column 0 (online-softmax invariant).
    b_l, q_l, k_l, last_l = [], [], [], []
    for b in range(B):
        for qi in range(nq):
            last = min((qi * tq + tq - 1) // tk, nk - 1)
            for ki in range(last + 1):
                b_l.append(b)
                q_l.append(qi)
                k_l.append(ki)
                last_l.append(last)
    n_steps = len(b_l)
    b_tbl = jnp.asarray(b_l, dtype=jnp.int32)
    q_tbl = jnp.asarray(q_l, dtype=jnp.int32)
    k_tbl = jnp.asarray(k_l, dtype=jnp.int32)
    last_tbl = jnp.asarray(last_l, dtype=jnp.int32)

    kernel = partial(_flash_causal_kernel, n_head=n_head, head_dim=hd,
                     block_q=tq, block_k=tk)

    def q_map(s, b_tbl, q_tbl, k_tbl, last_tbl):
        return (b_tbl[s], q_tbl[s], 0)

    def kv_map(s, b_tbl, q_tbl, k_tbl, last_tbl):
        return (b_tbl[s], k_tbl[s], 0)

    grid_spec = pltpu.PrefetchScalarGridSpec(
        num_scalar_prefetch=4,
        grid=(n_steps,),
        in_specs=[pl.BlockSpec((1, tq, C), q_map),
                  pl.BlockSpec((1, tk, C), kv_map),
                  pl.BlockSpec((1, tk, C), kv_map)],
        out_specs=pl.BlockSpec((1, tq, C), q_map),
        scratch_shapes=[
            pltpu.VMEM((tq, n_head), jnp.float32),   # running max (lane-packed)
            pltpu.VMEM((tq, n_head), jnp.float32),   # running sum (lane-packed)
            pltpu.VMEM((n_head, tq, hd), jnp.float32),  # output accumulator
        ])

    vmem_limit = _vmem_limit([
        ((1, tq, C), q.dtype, 2),
        ((1, tk, C), k.dtype, 2),
        ((1, tk, C), v.dtype, 2),
        ((1, tq, C), q.dtype, 2),
        ((tq, n_head), jnp.float32, 1),
        ((tq, n_head), jnp.float32, 1),
        ((n_head, tq, hd), jnp.float32, 1),
    ])

    return pl.pallas_call(
        kernel,
        grid_spec=grid_spec,
        out_shape=jax.ShapeDtypeStruct((B, T, C), q.dtype),
        compiler_params=pltpu.CompilerParams(
            dimension_semantics=("arbitrary",),
            vmem_limit_bytes=vmem_limit),
    )(b_tbl, q_tbl, k_tbl, last_tbl, q, k, v)


# ------------------------------ module wrapper -------------------------------

@partial(jax.jit, static_argnames=("n_head", "block_m", "block_q", "block_k",
                                   "compute_dtype"))
def causal_self_attention(x, w_attn, b_attn, w_proj, b_proj, *, n_head,
                          block_m=256, block_q=256, block_k=256,
                          compute_dtype=None):
    """Forward pass matching PyTorch CausalSelfAttention.forward.

    x: (B, T, C);  w_attn: (C, 3C);  b_attn: (3C,);  w_proj: (C, C);  b_proj: (C,)
    (weights stored as (in, out), i.e. x @ W + b == PyTorch x @ W_t.T + b)
    compute_dtype: e.g. jnp.bfloat16 to run all MXU matmuls in bf16 with f32
    accumulation; None keeps the input dtype.
    """
    B, T, C = x.shape
    assert C % n_head == 0
    hd = C // n_head
    out_dtype = x.dtype

    if compute_dtype is not None:
        x = x.astype(compute_dtype)
        w_attn = w_attn.astype(compute_dtype)
        b_attn = b_attn.astype(compute_dtype)
        w_proj = w_proj.astype(compute_dtype)
        b_proj = b_proj.astype(compute_dtype)

    # Fused qkv projection -> three separate (B*T, C) arrays (no XLA split);
    # the attention scale 1/sqrt(hd) is folded into q at store time.
    q, k, v = linear(x.reshape(B * T, C), w_attn, b_attn,
                     n_split=3, out_scales=(1.0 / math.sqrt(hd), 1.0, 1.0),
                     block_m=block_m)

    # Free row-major views; no transposes anywhere in the wrapper.
    q = q.reshape(B, T, C)
    k = k.reshape(B, T, C)
    v = v.reshape(B, T, C)

    y = causal_attention(q, k, v, n_head=n_head,
                         block_q=block_q, block_k=block_k)   # (B, T, C)

    y = linear(y.reshape(B * T, C), w_proj, b_proj,
               n_split=1, block_m=block_m)
    return y.reshape(B, T, C).astype(out_dtype)


# ------------------------------ reference (JAX) ------------------------------

def reference_forward(x, w_attn, b_attn, w_proj, b_proj, n_head):
    B, T, C = x.shape
    hd = C // n_head
    qkv = x @ w_attn + b_attn
    q, k, v = jnp.split(qkv, 3, axis=-1)
    q = q.reshape(B, T, n_head, hd).transpose(0, 2, 1, 3)
    k = k.reshape(B, T, n_head, hd).transpose(0, 2, 1, 3)
    v = v.reshape(B, T, n_head, hd).transpose(0, 2, 1, 3)
    s = (q @ k.swapaxes(-1, -2)) / math.sqrt(hd)
    mask = jnp.tril(jnp.ones((T, T), dtype=bool))
    s = jnp.where(mask, s, -jnp.inf)
    att = jax.nn.softmax(s, axis=-1)
    y = att @ v
    y = y.transpose(0, 2, 1, 3).reshape(B, T, C)
    return y @ w_proj + b_proj


# ----------------------------------- main ------------------------------------

if __name__ == "__main__":
    def run_check(B, T, C, n_head, block_q, block_k, key,
                  compute_dtype=None, rtol=2e-3, atol=2e-4):
        kx, kwa, kba, kwp, kbp = jax.random.split(key, 5)
        x = jax.random.normal(kx, (B, T, C), dtype=jnp.float32)
        # nn.Linear(C, 3C) weights stored as (in, out); nn.Linear(C, C) likewise.
        w_attn = 0.02 * jax.random.normal(kwa, (C, 3 * C), dtype=jnp.float32)
        b_attn = 0.01 * jax.random.normal(kba, (3 * C,), dtype=jnp.float32)
        w_proj = 0.02 * jax.random.normal(kwp, (C, C), dtype=jnp.float32)
        b_proj = 0.01 * jax.random.normal(kbp, (C,), dtype=jnp.float32)

        y = causal_self_attention(x, w_attn, b_attn, w_proj, b_proj,
                                  n_head=n_head,
                                  block_q=block_q, block_k=block_k,
                                  compute_dtype=compute_dtype)
        y = jax.block_until_ready(y)

        y_ref = reference_forward(x, w_attn, b_attn, w_proj, b_proj, n_head)
        assert y.shape == (B, T, C)
        err = float(jnp.max(jnp.abs(y - y_ref)))
        assert jnp.allclose(y, y_ref, rtol=rtol, atol=atol), f"mismatch: {err}"

    root = jax.random.PRNGKey(0)
    k1, k2, k3 = jax.random.split(root, 3)

    # Small shapes consistent with the module: B=2, T=8, C=32, n_head=4.
    run_check(2, 8, 32, 4, 256, 256, k1)
    # Multi-block flash path: exercises init/finalize, interior (unmasked) and
    # diagonal (masked) kv blocks, and the triangular step table.
    run_check(2, 128, 128, 4, 64, 64, k2)
    # bf16 MXU path (f32 accumulation everywhere); looser tolerance vs f32 ref.
    run_check(2, 128, 128, 4, 64, 64, k3,
              compute_dtype=jnp.bfloat16, rtol=5e-2, atol=1e-2)

    print("KERNEL_OK")
</pallas_src>

<mosaic_0001>
module attributes {stable_mosaic.version = 11 : i64} {
  func.func @_linear_split_kernel(%arg0: i32, %arg1: memref<16x32xf32, #tpu.memory_space<vmem>>, %arg2: memref<32x96xf32, #tpu.memory_space<vmem>>, %arg3: memref<1x96xf32, #tpu.memory_space<vmem>>, %arg4: memref<16x32xf32, #tpu.memory_space<vmem>>, %arg5: memref<16x32xf32, #tpu.memory_space<vmem>>, %arg6: memref<16x32xf32, #tpu.memory_space<vmem>>) attributes {dimension_semantics = [#tpu.dimension_semantics<parallel>], iteration_bounds = array<i64: 1>, scalar_prefetch = 0 : i64, scratch_operands = 0 : i64, tpu.core_type = #tpu.core_type<tc>, window_params = [{transform_indices = @transform_0, window_bounds = array<i64: 16, 32>}, {pipeline_mode = #tpu.pipeline_mode<synchronous>, transform_indices = @transform_1, window_bounds = array<i64: 32, 96>}, {pipeline_mode = #tpu.pipeline_mode<synchronous>, transform_indices = @transform_2, window_bounds = array<i64: 1, 96>}, {transform_indices = @transform_3, window_bounds = array<i64: 16, 32>}, {transform_indices = @transform_4, window_bounds = array<i64: 16, 32>}, {transform_indices = @transform_5, window_bounds = array<i64: 16, 32>}]} {
    %c0 = arith.constant 0 : index
    %c0_0 = arith.constant 0 : index
    %0 = vector.load %arg1[%c0, %c0_0] : memref<16x32xf32, #tpu.memory_space<vmem>>, vector<16x32xf32>
    %c0_1 = arith.constant 0 : index
    %c0_2 = arith.constant 0 : index
    %1 = vector.load %arg2[%c0_1, %c0_2] : memref<32x96xf32, #tpu.memory_space<vmem>>, vector<32x32xf32>
    %cst = arith.constant dense<0.000000e+00> : vector<16x32xf32>
    %2 = tpu.matmul %0, %1, %cst {dimension_numbers = #tpu.dot_dimension_numbers<[1], [0], [0], [1], [0, 0, 1, 1], [], []>} : vector<16x32xf32>, vector<32x32xf32>, vector<16x32xf32> -> vector<16x32xf32>
    %c0_3 = arith.constant 0 : index
    %c0_4 = arith.constant 0 : index
    %3 = vector.load %arg3[%c0_3, %c0_4] : memref<1x96xf32, #tpu.memory_space<vmem>>, vector<1x32xf32>
    %4 = vector.broadcast %3 : vector<1x32xf32> to vector<16x32xf32>
    %5 = arith.addf %2, %4 : vector<16x32xf32>
    %cst_5 = arith.constant 0.353553385 : f32
    %6 = vector.broadcast %cst_5 : f32 to vector<16x32xf32>
    %7 = arith.mulf %5, %6 : vector<16x32xf32>
    %c0_6 = arith.constant 0 : index
    %c0_7 = arith.constant 0 : index
    %8 = vector.load %arg4[%c0_6, %c0_7] : memref<16x32xf32, #tpu.memory_space<vmem>>, vector<16x32xf32>
    tpu.vector_store %arg4[%c0_6, %c0_7], %7 {strides = array<i32>} : memref<16x32xf32, #tpu.memory_space<vmem>>, vector<16x32xf32>,
    %c0_8 = arith.constant 0 : index
    %c32 = arith.constant 32 : index
    %9 = vector.load %arg2[%c0_8, %c32] : memref<32x96xf32, #tpu.memory_space<vmem>>, vector<32x32xf32>
    %cst_9 = arith.constant dense<0.000000e+00> : vector<16x32xf32>
    %10 = tpu.matmul %0, %9, %cst_9 {dimension_numbers = #tpu.dot_dimension_numbers<[1], [0], [0], [1], [0, 0, 1, 1], [], []>} : vector<16x32xf32>, vector<32x32xf32>, vector<16x32xf32> -> vector<16x32xf32>
    %c0_10 = arith.constant 0 : index
    %c32_11 = arith.constant 32 : index
    %11 = vector.load %arg3[%c0_10, %c32_11] : memref<1x96xf32, #tpu.memory_space<vmem>>, vector<1x32xf32>
    %12 = vector.broadcast %11 : vector<1x32xf32> to vector<16x32xf32>
    %13 = arith.addf %10, %12 : vector<16x32xf32>
    %c0_12 = arith.constant 0 : index
    %c0_13 = arith.constant 0 : index
    %14 = vector.load %arg5[%c0_12, %c0_13] : memref<16x32xf32, #tpu.memory_space<vmem>>, vector<16x32xf32>
    tpu.vector_store %arg5[%c0_12, %c0_13], %13 {strides = array<i32>} : memref<16x32xf32, #tpu.memory_space<vmem>>, vector<16x32xf32>,
    %c0_14 = arith.constant 0 : index
    %c64 = arith.constant 64 : index
    %15 = vector.load %arg2[%c0_14, %c64] : memref<32x96xf32, #tpu.memory_space<vmem>>, vector<32x32xf32>
    %cst_15 = arith.constant dense<0.000000e+00> : vector<16x32xf32>
    %16 = tpu.matmul %0, %15, %cst_15 {dimension_numbers = #tpu.dot_dimension_numbers<[1], [0], [0], [1], [0, 0, 1, 1], [], []>} : vector<16x32xf32>, vector<32x32xf32>, vector<16x32xf32> -> vector<16x32xf32>
    %c0_16 = arith.constant 0 : index
    %c64_17 = arith.constant 64 : index
    %17 = vector.load %arg3[%c0_16, %c64_17] : memref<1x96xf32, #tpu.memory_space<vmem>>, vector<1x32xf32>
    %18 = vector.broadcast %17 : vector<1x32xf32> to vector<16x32xf32>
    %19 = arith.addf %16, %18 : vector<16x32xf32>
    %c0_18 = arith.constant 0 : index
    %c0_19 = arith.constant 0 : index
    %20 = vector.load %arg6[%c0_18, %c0_19] : memref<16x32xf32, #tpu.memory_space<vmem>>, vector<16x32xf32>
    tpu.vector_store %arg6[%c0_18, %c0_19], %19 {strides = array<i32>} : memref<16x32xf32, #tpu.memory_space<vmem>>, vector<16x32xf32>,
    return
  }
  func.func @transform_0(%arg0: i32) -> (i32, i32) {
    %c0_i32 = arith.constant 0 : i32
    %c0_i32_0 = arith.constant 0 : i32
    return %arg0, %c0_i32 : i32, i32
  }
  func.func @transform_1(%arg0: i32) -> (i32, i32) {
    %c0_i32 = arith.constant 0 : i32
    %c0_i32_0 = arith.constant 0 : i32
    %c0_i32_1 = arith.constant 0 : i32
    return %c0_i32, %c0_i32_0 : i32, i32
  }
  func.func @transform_2(%arg0: i32) -> (i32, i32) {
    %c0_i32 = arith.constant 0 : i32
    %c0_i32_0 = arith.constant 0 : i32
    %c0_i32_1 = arith.constant 0 : i32
    return %c0_i32, %c0_i32_0 : i32, i32
  }
  func.func @transform_3(%arg0: i32) -> (i32, i32) {
    %c0_i32 = arith.constant 0 : i32
    %c0_i32_0 = arith.constant 0 : i32
    return %arg0, %c0_i32 : i32, i32
  }
  func.func @transform_4(%arg0: i32) -> (i32, i32) {
    %c0_i32 = arith.constant 0 : i32
    %c0_i32_0 = arith.constant 0 : i32
    return %arg0, %c0_i32 : i32, i32
  }
  func.func @transform_5(%arg0: i32) -> (i32, i32) {
    %c0_i32 = arith.constant 0 : i32
    %c0_i32_0 = arith.constant 0 : i32
    return %arg0, %c0_i32 : i32, i32
  }
}

module attributes {stable_mosaic.version = 11 : i64} {
  func.func @_flash_causal_kernel(%arg0: i32, %arg1: memref<2xi32, #tpu.memory_space<smem>>, %arg2: memref<2xi32, #tpu.memory_space<smem>>, %arg3: memref<2xi32, #tpu.memory_space<smem>>, %arg4: memref<2xi32, #tpu.memory_space<smem>>, %arg5: memref<1x8x32xf32, #tpu.memory_space<vmem>>, %arg6: memref<1x8x32xf32, #tpu.memory_space<vmem>>, %arg7: memref<1x8x32xf32, #tpu.memory_space<vmem>>, %arg8: memref<1x8x32xf32, #tpu.memory_space<vmem>>, %arg9: memref<8x4xf32, #tpu.memory_space<vmem>>, %arg10: memref<8x4xf32, #tpu.memory_space<vmem>>, %arg11: memref<4x8x8xf32, #tpu.memory_space<vmem>>) attributes {dimension_semantics = [#tpu.dimension_semantics<arbitrary>], iteration_bounds = array<i64: 2>, scalar_prefetch = 4 : i64, scratch_operands = 3 : i64, tpu.core_type = #tpu.core_type<tc>, window_params = [{transform_indices = @transform_0, window_bounds = array<i64: 1, 8, 32>}, {transform_indices = @transform_1, window_bounds = array<i64: 1, 8, 32>}, {transform_indices = @transform_2, window_bounds = array<i64: 1, 8, 32>}, {transform_indices = @transform_3, window_bounds = array<i64: 1, 8, 32>}]} {
    %0 = arith.index_cast %arg0 : i32 to index
    %1 = memref.load %arg2[%0] : memref<2xi32, #tpu.memory_space<smem>>
    %2 = arith.index_cast %arg0 : i32 to index
    %3 = memref.load %arg3[%2] : memref<2xi32, #tpu.memory_space<smem>>
    %4 = arith.index_cast %arg0 : i32 to index
    %5 = memref.load %arg4[%4] : memref<2xi32, #tpu.memory_space<smem>>
    %c8_i32 = arith.constant 8 : i32
    %6 = arith.muli %1, %c8_i32 : i32
    %c8_i32_0 = arith.constant 8 : i32
    %7 = arith.muli %3, %c8_i32_0 : i32
    %c0_i32 = arith.constant 0 : i32
    %8 = arith.cmpi eq, %3, %c0_i32 : i32
    %9 = arith.extui %8 : i1 to i32
    %c0_i32_1 = arith.constant 0 : i32
    %10 = arith.cmpi ne, %9, %c0_i32_1 : i32
    scf.if %10 {
      %cst = arith.constant -1.000000e+30 : f32
      %27 = vector.broadcast %cst : f32 to vector<8x4xf32>
      %c0_13 = arith.constant 0 : index
      %c0_14 = arith.constant 0 : index
      %28 = vector.load %arg9[%c0_13, %c0_14] : memref<8x4xf32, #tpu.memory_space<vmem>>, vector<8x4xf32>
      tpu.vector_store %arg9[%c0_13, %c0_14], %27 {strides = array<i32>} : memref<8x4xf32, #tpu.memory_space<vmem>>, vector<8x4xf32>,
      %cst_15 = arith.constant 0.000000e+00 : f32
      %29 = vector.broadcast %cst_15 : f32 to vector<8x4xf32>
      %c0_16 = arith.constant 0 : index
      %c0_17 = arith.constant 0 : index
      %30 = vector.load %arg10[%c0_16, %c0_17] : memref<8x4xf32, #tpu.memory_space<vmem>>, vector<8x4xf32>
      tpu.vector_store %arg10[%c0_16, %c0_17], %29 {strides = array<i32>} : memref<8x4xf32, #tpu.memory_space<vmem>>, vector<8x4xf32>,
      %cst_18 = arith.constant 0.000000e+00 : f32
      %31 = vector.broadcast %cst_18 : f32 to vector<4x8x8xf32>
      %c0_19 = arith.constant 0 : index
      %c0_20 = arith.constant 0 : index
      %c0_21 = arith.constant 0 : index
      %32 = vector.load %arg11[%c0_19, %c0_20, %c0_21] : memref<4x8x8xf32, #tpu.memory_space<vmem>>, vector<4x8x8xf32>
      tpu.vector_store %arg11[%c0_19, %c0_20, %c0_21], %31 {strides = array<i32>} : memref<4x8x8xf32, #tpu.memory_space<vmem>>, vector<4x8x8xf32>,
    } else {
    }
    %c0 = arith.constant 0 : index
    %c0_2 = arith.constant 0 : index
    %c0_3 = arith.constant 0 : index
    %11 = vector.load %arg5[%c0, %c0_2, %c0_3] : memref<1x8x32xf32, #tpu.memory_space<vmem>>, vector<1x8x32xf32>
    %12 = vector.shape_cast %11 : vector<1x8x32xf32> to vector<8x32xf32>
    %c0_4 = arith.constant 0 : index
    %c0_5 = arith.constant 0 : index
    %c0_6 = arith.constant 0 : index
    %13 = vector.load %arg6[%c0_4, %c0_5, %c0_6] : memref<1x8x32xf32, #tpu.memory_space<vmem>>, vector<1x8x32xf32>
    %14 = vector.shape_cast %13 : vector<1x8x32xf32> to vector<8x32xf32>
    %c0_7 = arith.constant 0 : index
    %c0_8 = arith.constant 0 : index
    %c0_9 = arith.constant 0 : index
    %15 = vector.load %arg7[%c0_7, %c0_8, %c0_9] : memref<1x8x32xf32, #tpu.memory_space<vmem>>, vector<1x8x32xf32>
    %16 = vector.shape_cast %15 : vector<1x8x32xf32> to vector<8x32xf32>
    %c7_i32 = arith.constant 7 : i32
    %17 = arith.addi %7, %c7_i32 : i32
    %18 = arith.cmpi sle, %17, %6 : i32
    %19 = arith.extui %18 : i1 to i32
    %c0_i32_10 = arith.constant 0 : i32
    %20 = arith.cmpi ne, %19, %c0_i32_10 : i32
    scf.if %20 {
      %27 = vector.extract_strided_slice %12 {offsets = [0, 0], sizes = [8, 8], strides = [1, 1]} : vector<8x32xf32> to vector<8x8xf32>
      %28 = vector.extract_strided_slice %14 {offsets = [0, 0], sizes = [8, 8], strides = [1, 1]} : vector<8x32xf32> to vector<8x8xf32>
      %cst = arith.constant dense<0.000000e+00> : vector<8x8xf32>
      %29 = tpu.matmul %27, %28, %cst {dimension_numbers = #tpu.dot_dimension_numbers<[1], [1], [0], [0], [0, 0, 1, 0], [], []>} : vector<8x8xf32>, vector<8x8xf32>, vector<8x8xf32> -> vector<8x8xf32>
      %c0_13 = arith.constant 0 : index
      %c0_14 = arith.constant 0 : index
      %30 = vector.load %arg9[%c0_13, %c0_14] : memref<8x4xf32, #tpu.memory_space<vmem>>, vector<8x1xf32>
      %cst_15 = arith.constant dense<0xFF800000> : vector<8xf32>
      %31 = vector.multi_reduction <maximumf>, %29, %cst_15 [1] : vector<8x8xf32> to vector<8xf32>
      %32 = vector.shape_cast %31 : vector<8xf32> to vector<8x1xf32>
      %33 = arith.maximumf %30, %32 : vector<8x1xf32>
      %34 = arith.subf %30, %33 : vector<8x1xf32>
      %35 = math.exp %34 : vector<8x1xf32>
      %36 = vector.broadcast %33 : vector<8x1xf32> to vector<8x8xf32>
      %37 = arith.subf %29, %36 : vector<8x8xf32>
      %38 = math.exp %37 : vector<8x8xf32>
      %c0_16 = arith.constant 0 : index
      %c0_17 = arith.constant 0 : index
      %39 = vector.load %arg10[%c0_16, %c0_17] : memref<8x4xf32, #tpu.memory_space<vmem>>, vector<8x1xf32>
      %40 = arith.mulf %35, %39 : vector<8x1xf32>
      %cst_18 = arith.constant dense<0.000000e+00> : vector<8xf32>
      %41 = vector.multi_reduction <add>, %38, %cst_18 [1] : vector<8x8xf32> to vector<8xf32>
      %42 = vector.shape_cast %41 : vector<8xf32> to vector<8x1xf32>
      %43 = arith.addf %40, %42 : vector<8x1xf32>
      %c0_19 = arith.constant 0 : index
      %c0_20 = arith.constant 0 : index
      %44 = vector.load %arg10[%c0_19, %c0_20] : memref<8x4xf32, #tpu.memory_space<vmem>>, vector<8x1xf32>
      tpu.vector_store %arg10[%c0_19, %c0_20], %43 {strides = array<i32>} : memref<8x4xf32, #tpu.memory_space<vmem>>, vector<8x1xf32>,
      %c0_21 = arith.constant 0 : index
      %c0_22 = arith.constant 0 : index
      %c0_23 = arith.constant 0 : index
      %45 = vector.load %arg11[%c0_21, %c0_22, %c0_23] : memref<4x8x8xf32, #tpu.memory_space<vmem>>, vector<1x8x8xf32>
      %46 = vector.shape_cast %45 : vector<1x8x8xf32> to vector<8x8xf32>
      %47 = vector.broadcast %35 : vector<8x1xf32> to vector<8x8xf32>
      %48 = arith.mulf %47, %46 : vector<8x8xf32>
      %49 = vector.extract_strided_slice %16 {offsets = [0, 0], sizes = [8, 8], strides = [1, 1]} : vector<8x32xf32> to vector<8x8xf32>
      %cst_24 = arith.constant dense<0.000000e+00> : vector<8x8xf32>
      %50 = tpu.matmul %38, %49, %cst_24 {dimension_numbers = #tpu.dot_dimension_numbers<[1], [0], [0], [1], [0, 0, 1, 1], [], []>} : vector<8x8xf32>, vector<8x8xf32>, vector<8x8xf32> -> vector<8x8xf32>
      %51 = arith.addf %48, %50 : vector<8x8xf32>
      %c0_25 = arith.constant 0 : index
      %c0_26 = arith.constant 0 : index
      %c0_27 = arith.constant 0 : index
      %52 = vector.load %arg11[%c0_25, %c0_26, %c0_27] : memref<4x8x8xf32, #tpu.memory_space<vmem>>, vector<1x8x8xf32>
      %53 = vector.shape_cast %52 : vector<1x8x8xf32> to vector<8x8xf32>
      %54 = vector.shape_cast %51 : vector<8x8xf32> to vector<1x8x8xf32>
      tpu.vector_store %arg11[%c0_25, %c0_26, %c0_27], %54 {strides = array<i32>} : memref<4x8x8xf32, #tpu.memory_space<vmem>>, vector<1x8x8xf32>,
      %c0_28 = arith.constant 0 : index
      %c0_29 = arith.constant 0 : index
      %55 = vector.load %arg9[%c0_28, %c0_29] : memref<8x4xf32, #tpu.memory_space<vmem>>, vector<8x1xf32>
      tpu.vector_store %arg9[%c0_28, %c0_29], %33 {strides = array<i32>} : memref<8x4xf32, #tpu.memory_space<vmem>>, vector<8x1xf32>,
      %56 = vector.extract_strided_slice %12 {offsets = [0, 8], sizes = [8, 8], strides = [1, 1]} : vector<8x32xf32> to vector<8x8xf32>
      %57 = vector.extract_strided_slice %14 {offsets = [0, 8], sizes = [8, 8], strides = [1, 1]} : vector<8x32xf32> to vector<8x8xf32>
      %cst_30 = arith.constant dense<0.000000e+00> : vector<8x8xf32>
      %58 = tpu.matmul %56, %57, %cst_30 {dimension_numbers = #tpu.dot_dimension_numbers<[1], [1], [0], [0], [0, 0, 1, 0], [], []>} : vector<8x8xf32>, vector<8x8xf32>, vector<8x8xf32> -> vector<8x8xf32>
      %c0_31 = arith.constant 0 : index
      %c1 = arith.constant 1 : index
      %59 = vector.load %arg9[%c0_31, %c1] : memref<8x4xf32, #tpu.memory_space<vmem>>, vector<8x1xf32>
      %cst_32 = arith.constant dense<0xFF800000> : vector<8xf32>
      %60 = vector.multi_reduction <maximumf>, %58, %cst_32 [1] : vector<8x8xf32> to vector<8xf32>
      %61 = vector.shape_cast %60 : vector<8xf32> to vector<8x1xf32>
      %62 = arith.maximumf %59, %61 : vector<8x1xf32>
      %63 = arith.subf %59, %62 : vector<8x1xf32>
      %64 = math.exp %63 : vector<8x1xf32>
      %65 = vector.broadcast %62 : vector<8x1xf32> to vector<8x8xf32>
      %66 = arith.subf %58, %65 : vector<8x8xf32>
      %67 = math.exp %66 : vector<8x8xf32>
      %c0_33 = arith.constant 0 : index
      %c1_34 = arith.constant 1 : index
      %68 = vector.load %arg10[%c0_33, %c1_34] : memref<8x4xf32, #tpu.memory_space<vmem>>, vector<8x1xf32>
      %69 = arith.mulf %64, %68 : vector<8x1xf32>
      %cst_35 = arith.constant dense<0.000000e+00> : vector<8xf32>
      %70 = vector.multi_reduction <add>, %67, %cst_35 [1] : vector<8x8xf32> to vector<8xf32>
      %71 = vector.shape_cast %70 : vector<8xf32> to vector<8x1xf32>
      %72 = arith.addf %69, %71 : vector<8x1xf32>
      %c0_36 = arith.constant 0 : index
      %c1_37 = arith.constant 1 : index
      %73 = vector.load %arg10[%c0_36, %c1_37] : memref<8x4xf32, #tpu.memory_space<vmem>>, vector<8x1xf32>
      tpu.vector_store %arg10[%c0_36, %c1_37], %72 {strides = array<i32>} : memref<8x4xf32, #tpu.memory_space<vmem>>, vector<8x1xf32>,
      %c1_38 = arith.constant 1 : index
      %c0_39 = arith.constant 0 : index
      %c0_40 = arith.constant 0 : index
      %74 = vector.load %arg11[%c1_38, %c0_39, %c0_40] : memref<4x8x8xf32, #tpu.memory_space<vmem>>, vector<1x8x8xf32>
      %75 = vector.shape_cast %74 : vector<1x8x8xf32> to vector<8x8xf32>
      %76 = vector.broadcast %64 : vector<8x1xf32> to vector<8x8xf32>
      %77 = arith.mulf %76, %75 : vector<8x8xf32>
      %78 = vector.extract_strided_slice %16 {offsets = [0, 8], sizes = [8, 8], strides = [1, 1]} : vector<8x32xf32> to vector<8x8xf32>
      %cst_41 = arith.constant dense<0.000000e+00> : vector<8x8xf32>
      %79 = tpu.matmul %67, %78, %cst_41 {dimension_numbers = #tpu.dot_dimension_numbers<[1], [0], [0], [1], [0, 0, 1, 1], [], []>} : vector<8x8xf32>, vector<8x8xf32>, vector<8x8xf32> -> vector<8x8xf32>
      %80 = arith.addf %77, %79 : vector<8x8xf32>
      %c1_42 = arith.constant 1 : index
      %c0_43 = arith.constant 0 : index
      %c0_44 = arith.constant 0 : index
      %81 = vector.load %arg11[%c1_42, %c0_43, %c0_44] : memref<4x8x8xf32, #tpu.memory_space<vmem>>, vector<1x8x8xf32>
      %82 = vector.shape_cast %81 : vector<1x8x8xf32> to vector<8x8xf32>
      %83 = vector.shape_cast %80 : vector<8x8xf32> to vector<1x8x8xf32>
      tpu.vector_store %arg11[%c1_42, %c0_43, %c0_44], %83 {strides = array<i32>} : memref<4x8x8xf32, #tpu.memory_space<vmem>>, vector<1x8x8xf32>,
      %c0_45 = arith.constant 0 : index
      %c1_46 = arith.constant 1 : index
      %84 = vector.load %arg9[%c0_45, %c1_46] : memref<8x4xf32, #tpu.memory_space<vmem>>, vector<8x1xf32>
      tpu.vector_store %arg9[%c0_45, %c1_46], %62 {strides = array<i32>} : memref<8x4xf32, #tpu.memory_space<vmem>>, vector<8x1xf32>,
      %85 = vector.extract_strided_slice %12 {offsets = [0, 16], sizes = [8, 8], strides = [1, 1]} : vector<8x32xf32> to vector<8x8xf32>
      %86 = vector.extract_strided_slice %14 {offsets = [0, 16], sizes = [8, 8], strides = [1, 1]} : vector<8x32xf32> to vector<8x8xf32>
      %cst_47 = arith.constant dense<0.000000e+00> : vector<8x8xf32>
      %87 = tpu.matmul %85, %86, %cst_47 {dimension_numbers = #tpu.dot_dimension_numbers<[1], [1], [0], [0], [0, 0, 1, 0], [], []>} : vector<8x8xf32>, vector<8x8xf32>, vector<8x8xf32> -> vector<8x8xf32>
      %c0_48 = arith.constant 0 : index
      %c2 = arith.constant 2 : index
      %88 = vector.load %arg9[%c0_48, %c2] : memref<8x4xf32, #tpu.memory_space<vmem>>, vector<8x1xf32>
      %cst_49 = arith.constant dense<0xFF800000> : vector<8xf32>
      %89 = vector.multi_reduction <maximumf>, %87, %cst_49 [1] : vector<8x8xf32> to vector<8xf32>
      %90 = vector.shape_cast %89 : vector<8xf32> to vector<8x1xf32>
      %91 = arith.maximumf %88, %90 : vector<8x1xf32>
      %92 = arith.subf %88, %91 : vector<8x1xf32>
      %93 = math.exp %92 : vector<8x1xf32>
      %94 = vector.broadcast %91 : vector<8x1xf32> to vector<8x8xf32>
      %95 = arith.subf %87, %94 : vector<8x8xf32>
      %96 = math.exp %95 : vector<8x8xf32>
      %c0_50 = arith.constant 0 : index
      %c2_51 = arith.constant 2 : index
      %97 = vector.load %arg10[%c0_50, %c2_51] : memref<8x4xf32, #tpu.memory_space<vmem>>, vector<8x1xf32>
      %98 = arith.mulf %93, %97 : vector<8x1xf32>
      %cst_52 = arith.constant dense<0.000000e+00> : vector<8xf32>
      %99 = vector.multi_reduction <add>, %96, %cst_52 [1] : vector<8x8xf32> to vector<8xf32>
      %100 = vector.shape_cast %99 : vector<8xf32> to vector<8x1xf32>
      %101 = arith.addf %98, %100 : vector<8x1xf32>
      %c0_53 = arith.constant 0 : index
      %c2_54 = arith.constant 2 : index
      %102 = vector.load %arg10[%c0_53, %c2_54] : memref<8x4xf32, #tpu.memory_space<vmem>>, vector<8x1xf32>
      tpu.vector_store %arg10[%c0_53, %c2_54], %101 {strides = array<i32>} : memref<8x4xf32, #tpu.memory_space<vmem>>, vector<8x1xf32>,
      %c2_55 = arith.constant 2 : index
      %c0_56 = arith.constant 0 : index
      %c0_57 = arith.constant 0 : index
      %103 = vector.load %arg11[%c2_55, %c0_56, %c0_57] : memref<4x8x8xf32, #tpu.memory_space<vmem>>, vector<1x8x8xf32>
      %104 = vector.shape_cast %103 : vector<1x8x8xf32> to vector<8x8xf32>
      %105 = vector.broadcast %93 : vector<8x1xf32> to vector<8x8xf32>
      %106 = arith.mulf %105, %104 : vector<8x8xf32>
      %107 = vector.extract_strided_slice %16 {offsets = [0, 16], sizes = [8, 8], strides = [1, 1]} : vector<8x32xf32> to vector<8x8xf32>
      %cst_58 = arith.constant dense<0.000000e+00> : vector<8x8xf32>
      %108 = tpu.matmul %96, %107, %cst_58 {dimension_numbers = #tpu.dot_dimension_numbers<[1], [0], [0], [1], [0, 0, 1, 1], [], []>} : vector<8x8xf32>, vector<8x8xf32>, vector<8x8xf32> -> vector<8x8xf32>
      %109 = arith.addf %106, %108 : vector<8x8xf32>
      %c2_59 = arith.constant 2 : index
      %c0_60 = arith.constant 0 : index
      %c0_61 = arith.constant 0 : index
      %110 = vector.load %arg11[%c2_59, %c0_60, %c0_61] : memref<4x8x8xf32, #tpu.memory_space<vmem>>, vector<1x8x8xf32>
      %111 = vector.shape_cast %110 : vector<1x8x8xf32> to vector<8x8xf32>
      %112 = vector.shape_cast %109 : vector<8x8xf32> to vector<1x8x8xf32>
      tpu.vector_store %arg11[%c2_59, %c0_60, %c0_61], %112 {strides = array<i32>} : memref<4x8x8xf32, #tpu.memory_space<vmem>>, vector<1x8x8xf32>,
      %c0_62 = arith.constant 0 : index
      %c2_63 = arith.constant 2 : index
      %113 = vector.load %arg9[%c0_62, %c2_63] : memref<8x4xf32, #tpu.memory_space<vmem>>, vector<8x1xf32>
      tpu.vector_store %arg9[%c0_62, %c2_63], %91 {strides = array<i32>} : memref<8x4xf32, #tpu.memory_space<vmem>>, vector<8x1xf32>,
      %114 = vector.extract_strided_slice %12 {offsets = [0, 24], sizes = [8, 8], strides = [1, 1]} : vector<8x32xf32> to vector<8x8xf32>
      %115 = vector.extract_strided_slice %14 {offsets = [0, 24], sizes = [8, 8], strides = [1, 1]} : vector<8x32xf32> to vector<8x8xf32>
      %cst_64 = arith.constant dense<0.000000e+00> : vector<8x8xf32>
      %116 = tpu.matmul %114, %115, %cst_64 {dimension_numbers = #tpu.dot_dimension_numbers<[1], [1], [0], [0], [0, 0, 1, 0], [], []>} : vector<8x8xf32>, vector<8x8xf32>, vector<8x8xf32> -> vector<8x8xf32>
      %c0_65 = arith.constant 0 : index
      %c3 = arith.constant 3 : index
      %117 = vector.load %arg9[%c0_65, %c3] : memref<8x4xf32, #tpu.memory_space<vmem>>, vector<8x1xf32>
      %cst_66 = arith.constant dense<0xFF800000> : vector<8xf32>
      %118 = vector.multi_reduction <maximumf>, %116, %cst_66 [1] : vector<8x8xf32> to vector<8xf32>
      %119 = vector.shape_cast %118 : vector<8xf32> to vector<8x1xf32>
      %120 = arith.maximumf %117, %119 : vector<8x1xf32>
      %121 = arith.subf %117, %120 : vector<8x1xf32>
      %122 = math.exp %121 : vector<8x1xf32>
      %123 = vector.broadcast %120 : vector<8x1xf32> to vector<8x8xf32>
      %124 = arith.subf %116, %123 : vector<8x8xf32>
      %125 = math.exp %124 : vector<8x8xf32>
      %c0_67 = arith.constant 0 : index
      %c3_68 = arith.constant 3 : index
      %126 = vector.load %arg10[%c0_67, %c3_68] : memref<8x4xf32, #tpu.memory_space<vmem>>, vector<8x1xf32>
      %127 = arith.mulf %122, %126 : vector<8x1xf32>
      %cst_69 = arith.constant dense<0.000000e+00> : vector<8xf32>
      %128 = vector.multi_reduction <add>, %125, %cst_69 [1] : vector<8x8xf32> to vector<8xf32>
      %129 = vector.shape_cast %128 : vector<8xf32> to vector<8x1xf32>
      %130 = arith.addf %127, %129 : vector<8x1xf32>
      %c0_70 = arith.constant 0 : index
      %c3_71 = arith.constant 3 : index
      %131 = vector.load %arg10[%c0_70, %c3_71] : memref<8x4xf32, #tpu.memory_space<vmem>>, vector<8x1xf32>
      tpu.vector_store %arg10[%c0_70, %c3_71], %130 {strides = array<i32>} : memref<8x4xf32, #tpu.memory_space<vmem>>, vector<8x1xf32>,
      %c3_72 = arith.constant 3 : index
      %c0_73 = arith.constant 0 : index
      %c0_74 = arith.constant 0 : index
      %132 = vector.load %arg11[%c3_72, %c0_73, %c0_74] : memref<4x8x8xf32, #tpu.memory_space<vmem>>, vector<1x8x8xf32>
      %133 = vector.shape_cast %132 : vector<1x8x8xf32> to vector<8x8xf32>
      %134 = vector.broadcast %122 : vector<8x1xf32> to vector<8x8xf32>
      %135 = arith.mulf %134, %133 : vector<8x8xf32>
      %136 = vector.extract_strided_slice %16 {offsets = [0, 24], sizes = [8, 8], strides = [1, 1]} : vector<8x32xf32> to vector<8x8xf32>
      %cst_75 = arith.constant dense<0.000000e+00> : vector<8x8xf32>
      %137 = tpu.matmul %125, %136, %cst_75 {dimension_numbers = #tpu.dot_dimension_numbers<[1], [0], [0], [1], [0, 0, 1, 1], [], []>} : vector<8x8xf32>, vector<8x8xf32>, vector<8x8xf32> -> vector<8x8xf32>
      %138 = arith.addf %135, %137 : vector<8x8xf32>
      %c3_76 = arith.constant 3 : index
      %c0_77 = arith.constant 0 : index
      %c0_78 = arith.constant 0 : index
      %139 = vector.load %arg11[%c3_76, %c0_77, %c0_78] : memref<4x8x8xf32, #tpu.memory_space<vmem>>, vector<1x8x8xf32>
      %140 = vector.shape_cast %139 : vector<1x8x8xf32> to vector<8x8xf32>
      %141 = vector.shape_cast %138 : vector<8x8xf32> to vector<1x8x8xf32>
      tpu.vector_store %arg11[%c3_76, %c0_77, %c0_78], %141 {strides = array<i32>} : memref<4x8x8xf32, #tpu.memory_space<vmem>>, vector<1x8x8xf32>,
      %c0_79 = arith.constant 0 : index
      %c3_80 = arith.constant 3 : index
      %142 = vector.load %arg9[%c0_79, %c3_80] : memref<8x4xf32, #tpu.memory_space<vmem>>, vector<8x1xf32>
      tpu.vector_store %arg9[%c0_79, %c3_80], %120 {strides = array<i32>} : memref<8x4xf32, #tpu.memory_space<vmem>>, vector<8x1xf32>,
    } else {
    }
    %true = arith.constant true
    %21 = arith.xori %18, %true : i1
    %22 = arith.extui %21 : i1 to i32
    %c0_i32_11 = arith.constant 0 : i32
    %23 = arith.cmpi ne, %22, %c0_i32_11 : i32
    scf.if %23 {
      %27 = tpu.iota {dimensions = array<i32: 0>} : vector<8x8xi32>
      %28 = vector.broadcast %6 : i32 to vector<8x8xi32>
      %29 = arith.addi %28, %27 : vector<8x8xi32>
      %30 = tpu.iota {dimensions = array<i32: 1>} : vector<8x8xi32>
      %31 = vector.broadcast %7 : i32 to vector<8x8xi32>
      %32 = arith.addi %31, %30 : vector<8x8xi32>
      %33 = arith.cmpi sle, %32, %29 : vector<8x8xi32>
      %34 = vector.extract_strided_slice %12 {offsets = [0, 0], sizes = [8, 8], strides = [1, 1]} : vector<8x32xf32> to vector<8x8xf32>
      %35 = vector.extract_strided_slice %14 {offsets = [0, 0], sizes = [8, 8], strides = [1, 1]} : vector<8x32xf32> to vector<8x8xf32>
      %cst = arith.constant dense<0.000000e+00> : vector<8x8xf32>
      %36 = tpu.matmul %34, %35, %cst {dimension_numbers = #tpu.dot_dimension_numbers<[1], [1], [0], [0], [0, 0, 1, 0], [], []>} : vector<8x8xf32>, vector<8x8xf32>, vector<8x8xf32> -> vector<8x8xf32>
      %cst_13 = arith.constant -1.000000e+30 : f32
      %37 = vector.broadcast %cst_13 : f32 to vector<8x8xf32>
      %38 = arith.select %33, %36, %37 : vector<8x8xi1>, vector<8x8xf32>
      %c0_14 = arith.constant 0 : index
      %c0_15 = arith.constant 0 : index
      %39 = vector.load %arg9[%c0_14, %c0_15] : memref<8x4xf32, #tpu.memory_space<vmem>>, vector<8x1xf32>
      %cst_16 = arith.constant dense<0xFF800000> : vector<8xf32>
      %40 = vector.multi_reduction <maximumf>, %38, %cst_16 [1] : vector<8x8xf32> to vector<8xf32>
      %41 = vector.shape_cast %40 : vector<8xf32> to vector<8x1xf32>
      %42 = arith.maximumf %39, %41 : vector<8x1xf32>
      %43 = arith.subf %39, %42 : vector<8x1xf32>
      %44 = math.exp %43 : vector<8x1xf32>
      %45 = vector.broadcast %42 : vector<8x1xf32> to vector<8x8xf32>
      %46 = arith.subf %38, %45 : vector<8x8xf32>
      %47 = math.exp %46 : vector<8x8xf32>
      %c0_17 = arith.constant 0 : index
      %c0_18 = arith.constant 0 : index
      %48 = vector.load %arg10[%c0_17, %c0_18] : memref<8x4xf32, #tpu.memory_space<vmem>>, vector<8x1xf32>
      %49 = arith.mulf %44, %48 : vector<8x1xf32>
      %cst_19 = arith.constant dense<0.000000e+00> : vector<8xf32>
      %50 = vector.multi_reduction <add>, %47, %cst_19 [1] : vector<8x8xf32> to vector<8xf32>
      %51 = vector.shape_cast %50 : vector<8xf32> to vector<8x1xf32>
      %52 = arith.addf %49, %51 : vector<8x1xf32>
      %c0_20 = arith.constant 0 : index
      %c0_21 = arith.constant 0 : index
      %53 = vector.load %arg10[%c0_20, %c0_21] : memref<8x4xf32, #tpu.memory_space<vmem>>, vector<8x1xf32>
      tpu.vector_store %arg10[%c0_20, %c0_21], %52 {strides = array<i32>} : memref<8x4xf32, #tpu.memory_space<vmem>>, vector<8x1xf32>,
      %c0_22 = arith.constant 0 : index
      %c0_23 = arith.constant 0 : index
      %c0_24 = arith.constant 0 : index
      %54 = vector.load %arg11[%c0_22, %c0_23, %c0_24] : memref<4x8x8xf32, #tpu.memory_space<vmem>>, vector<1x8x8xf32>
      %55 = vector.shape_cast %54 : vector<1x8x8xf32> to vector<8x8xf32>
      %56 = vector.broadcast %44 : vector<8x1xf32> to vector<8x8xf32>
      %57 = arith.mulf %56, %55 : vector<8x8xf32>
      %58 = vector.extract_strided_slice %16 {offsets = [0, 0], sizes = [8, 8], strides = [1, 1]} : vector<8x32xf32> to vector<8x8xf32>
      %cst_25 = arith.constant dense<0.000000e+00> : vector<8x8xf32>
      %59 = tpu.matmul %47, %58, %cst_25 {dimension_numbers = #tpu.dot_dimension_numbers<[1], [0], [0], [1], [0, 0, 1, 1], [], []>} : vector<8x8xf32>, vector<8x8xf32>, vector<8x8xf32> -> vector<8x8xf32>
      %60 = arith.addf %57, %59 : vector<8x8xf32>
      %c0_26 = arith.constant 0 : index
      %c0_27 = arith.constant 0 : index
      %c0_28 = arith.constant 0 : index
      %61 = vector.load %arg11[%c0_26, %c0_27, %c0_28] : memref<4x8x8xf32, #tpu.memory_space<vmem>>, vector<1x8x8xf32>
      %62 = vector.shape_cast %61 : vector<1x8x8xf32> to vector<8x8xf32>
      %63 = vector.shape_cast %60 : vector<8x8xf32> to vector<1x8x8xf32>
      tpu.vector_store %arg11[%c0_26, %c0_27, %c0_28], %63 {strides = array<i32>} : memref<4x8x8xf32, #tpu.memory_space<vmem>>, vector<1x8x8xf32>,
      %c0_29 = arith.constant 0 : index
      %c0_30 = arith.constant 0 : index
      %64 = vector.load %arg9[%c0_29, %c0_30] : memref<8x4xf32, #tpu.memory_space<vmem>>, vector<8x1xf32>
      tpu.vector_store %arg9[%c0_29, %c0_30], %42 {strides = array<i32>} : memref<8x4xf32, #tpu.memory_space<vmem>>, vector<8x1xf32>,
      %65 = vector.extract_strided_slice %12 {offsets = [0, 8], sizes = [8, 8], strides = [1, 1]} : vector<8x32xf32> to vector<8x8xf32>
      %66 = vector.extract_strided_slice %14 {offsets = [0, 8], sizes = [8, 8], strides = [1, 1]} : vector<8x32xf32> to vector<8x8xf32>
      %cst_31 = arith.constant dense<0.000000e+00> : vector<8x8xf32>
      %67 = tpu.matmul %65, %66, %cst_31 {dimension_numbers = #tpu.dot_dimension_numbers<[1], [1], [0], [0], [0, 0, 1, 0], [], []>} : vector<8x8xf32>, vector<8x8xf32>, vector<8x8xf32> -> vector<8x8xf32>
      %cst_32 = arith.constant -1.000000e+30 : f32
      %68 = vector.broadcast %cst_32 : f32 to vector<8x8xf32>
      %69 = arith.select %33, %67, %68 : vector<8x8xi1>, vector<8x8xf32>
      %c0_33 = arith.constant 0 : index
      %c1 = arith.constant 1 : index
      %70 = vector.load %arg9[%c0_33, %c1] : memref<8x4xf32, #tpu.memory_space<vmem>>, vector<8x1xf32>
      %cst_34 = arith.constant dense<0xFF800000> : vector<8xf32>
      %71 = vector.multi_reduction <maximumf>, %69, %cst_34 [1] : vector<8x8xf32> to vector<8xf32>
      %72 = vector.shape_cast %71 : vector<8xf32> to vector<8x1xf32>
      %73 = arith.maximumf %70, %72 : vector<8x1xf32>
      %74 = arith.subf %70, %73 : vector<8x1xf32>
      %75 = math.exp %74 : vector<8x1xf32>
      %76 = vector.broadcast %73 : vector<8x1xf32> to vector<8x8xf32>
      %77 = arith.subf %69, %76 : vector<8x8xf32>
      %78 = math.exp %77 : vector<8x8xf32>
      %c0_35 = arith.constant 0 : index
      %c1_36 = arith.constant 1 : index
      %79 = vector.load %arg10[%c0_35, %c1_36] : memref<8x4xf32, #tpu.memory_space<vmem>>, vector<8x1xf32>
      %80 = arith.mulf %75, %79 : vector<8x1xf32>
      %cst_37 = arith.constant dense<0.000000e+00> : vector<8xf32>
      %81 = vector.multi_reduction <add>, %78, %cst_37 [1] : vector<8x8xf32> to vector<8xf32>
      %82 = vector.shape_cast %81 : vector<8xf32> to vector<8x1xf32>
      %83 = arith.addf %80, %82 : vector<8x1xf32>
      %c0_38 = arith.constant 0 : index
      %c1_39 = arith.constant 1 : index
      %84 = vector.load %arg10[%c0_38, %c1_39] : memref<8x4xf32, #tpu.memory_space<vmem>>, vector<8x1xf32>
      tpu.vector_store %arg10[%c0_38, %c1_39], %83 {strides = array<i32>} : memref<8x4xf32, #tpu.memory_space<vmem>>, vector<8x1xf32>,
      %c1_40 = arith.constant 1 : index
      %c0_41 = arith.constant 0 : index
      %c0_42 = arith.constant 0 : index
      %85 = vector.load %arg11[%c1_40, %c0_41, %c0_42] : memref<4x8x8xf32, #tpu.memory_space<vmem>>, vector<1x8x8xf32>
      %86 = vector.shape_cast %85 : vector<1x8x8xf32> to vector<8x8xf32>
      %87 = vector.broadcast %75 : vector<8x1xf32> to vector<8x8xf32>
      %88 = arith.mulf %87, %86 : vector<8x8xf32>
      %89 = vector.extract_strided_slice %16 {offsets = [0, 8], sizes = [8, 8], strides = [1, 1]} : vector<8x32xf32> to vector<8x8xf32>
      %cst_43 = arith.constant dense<0.000000e+00> : vector<8x8xf32>
      %90 = tpu.matmul %78, %89, %cst_43 {dimension_numbers = #tpu.dot_dimension_numbers<[1], [0], [0], [1], [0, 0, 1, 1], [], []>} : vector<8x8xf32>, vector<8x8xf32>, vector<8x8xf32> -> vector<8x8xf32>
      %91 = arith.addf %88, %90 : vector<8x8xf32>
      %c1_44 = arith.constant 1 : index
      %c0_45 = arith.constant 0 : index
      %c0_46 = arith.constant 0 : index
      %92 = vector.load %arg11[%c1_44, %c0_45, %c0_46] : memref<4x8x8xf32, #tpu.memory_space<vmem>>, vector<1x8x8xf32>
      %93 = vector.shape_cast %92 : vector<1x8x8xf32> to vector<8x8xf32>
      %94 = vector.shape_cast %91 : vector<8x8xf32> to vector<1x8x8xf32>
      tpu.vector_store %arg11[%c1_44, %c0_45, %c0_46], %94 {strides = array<i32>} : memref<4x8x8xf32, #tpu.memory_space<vmem>>, vector<1x8x8xf32>,
      %c0_47 = arith.constant 0 : index
      %c1_48 = arith.constant 1 : index
      %95 = vector.load %arg9[%c0_47, %c1_48] : memref<8x4xf32, #tpu.memory_space<vmem>>, vector<8x1xf32>
      tpu.vector_store %arg9[%c0_47, %c1_48], %73 {strides = array<i32>} : memref<8x4xf32, #tpu.memory_space<vmem>>, vector<8x1xf32>,
      %96 = vector.extract_strided_slice %12 {offsets = [0, 16], sizes = [8, 8], strides = [1, 1]} : vector<8x32xf32> to vector<8x8xf32>
      %97 = vector.extract_strided_slice %14 {offsets = [0, 16], sizes = [8, 8], strides = [1, 1]} : vector<8x32xf32> to vector<8x8xf32>
      %cst_49 = arith.constant dense<0.000000e+00> : vector<8x8xf32>
      %98 = tpu.matmul %96, %97, %cst_49 {dimension_numbers = #tpu.dot_dimension_numbers<[1], [1], [0], [0], [0, 0, 1, 0], [], []>} : vector<8x8xf32>, vector<8x8xf32>, vector<8x8xf32> -> vector<8x8xf32>
      %cst_50 = arith.constant -1.000000e+30 : f32
      %99 = vector.broadcast %cst_50 : f32 to vector<8x8xf32>
      %100 = arith.select %33, %98, %99 : vector<8x8xi1>, vector<8x8xf32>
      %c0_51 = arith.constant 0 : index
      %c2 = arith.constant 2 : index
      %101 = vector.load %arg9[%c0_51, %c2] : memref<8x4xf32, #tpu.memory_space<vmem>>, vector<8x1xf32>
      %cst_52 = arith.constant dense<0xFF800000> : vector<8xf32>
      %102 = vector.multi_reduction <maximumf>, %100, %cst_52 [1] : vector<8x8xf32> to vector<8xf32>
      %103 = vector.shape_cast %102 : vector<8xf32> to vector<8x1xf32>
      %104 = arith.maximumf %101, %103 : vector<8x1xf32>
      %105 = arith.subf %101, %104 : vector<8x1xf32>
      %106 = math.exp %105 : vector<8x1xf32>
      %107 = vector.broadcast %104 : vector<8x1xf32> to vector<8x8xf32>
      %108 = arith.subf %100, %107 : vector<8x8xf32>
      %109 = math.exp %108 : vector<8x8xf32>
      %c0_53 = arith.constant 0 : index
      %c2_54 = arith.constant 2 : index
      %110 = vector.load %arg10[%c0_53, %c2_54] : memref<8x4xf32, #tpu.memory_space<vmem>>, vector<8x1xf32>
      %111 = arith.mulf %106, %110 : vector<8x1xf32>
      %cst_55 = arith.constant dense<0.000000e+00> : vector<8xf32>
      %112 = vector.multi_reduction <add>, %109, %cst_55 [1] : vector<8x8xf32> to vector<8xf32>
      %113 = vector.shape_cast %112 : vector<8xf32> to vector<8x1xf32>
      %114 = arith.addf %111, %113 : vector<8x1xf32>
      %c0_56 = arith.constant 0 : index
      %c2_57 = arith.constant 2 : index
      %115 = vector.load %arg10[%c0_56, %c2_57] : memref<8x4xf32, #tpu.memory_space<vmem>>, vector<8x1xf32>
      tpu.vector_store %arg10[%c0_56, %c2_57], %114 {strides = array<i32>} : memref<8x4xf32, #tpu.memory_space<vmem>>, vector<8x1xf32>,
      %c2_58 = arith.constant 2 : index
      %c0_59 = arith.constant 0 : index
      %c0_60 = arith.constant 0 : index
      %116 = vector.load %arg11[%c2_58, %c0_59, %c0_60] : memref<4x8x8xf32, #tpu.memory_space<vmem>>, vector<1x8x8xf32>
      %117 = vector.shape_cast %116 : vector<1x8x8xf32> to vector<8x8xf32>
      %118 = vector.broadcast %106 : vector<8x1xf32> to vector<8x8xf32>
      %119 = arith.mulf %118, %117 : vector<8x8xf32>
      %120 = vector.extract_strided_slice %16 {offsets = [0, 16], sizes = [8, 8], strides = [1, 1]} : vector<8x32xf32> to vector<8x8xf32>
      %cst_61 = arith.constant dense<0.000000e+00> : vector<8x8xf32>
      %121 = tpu.matmul %109, %120, %cst_61 {dimension_numbers = #tpu.dot_dimension_numbers<[1], [0], [0], [1], [0, 0, 1, 1], [], []>} : vector<8x8xf32>, vector<8x8xf32>, vector<8x8xf32> -> vector<8x8xf32>
      %122 = arith.addf %119, %121 : vector<8x8xf32>
      %c2_62 = arith.constant 2 : index
      %c0_63 = arith.constant 0 : index
      %c0_64 = arith.constant 0 : index
      %123 = vector.load %arg11[%c2_62, %c0_63, %c0_64] : memref<4x8x8xf32, #tpu.memory_space<vmem>>, vector<1x8x8xf32>
      %124 = vector.shape_cast %123 : vector<1x8x8xf32> to vector<8x8xf32>
      %125 = vector.shape_cast %122 : vector<8x8xf32> to vector<1x8x8xf32>
      tpu.vector_store %arg11[%c2_62, %c0_63, %c0_64], %125 {strides = array<i32>} : memref<4x8x8xf32, #tpu.memory_space<vmem>>, vector<1x8x8xf32>,
      %c0_65 = arith.constant 0 : index
      %c2_66 = arith.constant 2 : index
      %126 = vector.load %arg9[%c0_65, %c2_66] : memref<8x4xf32, #tpu.memory_space<vmem>>, vector<8x1xf32>
      tpu.vector_store %arg9[%c0_65, %c2_66], %104 {strides = array<i32>} : memref<8x4xf32, #tpu.memory_space<vmem>>, vector<8x1xf32>,
      %127 = vector.extract_strided_slice %12 {offsets = [0, 24], sizes = [8, 8], strides = [1, 1]} : vector<8x32xf32> to vector<8x8xf32>
      %128 = vector.extract_strided_slice %14 {offsets = [0, 24], sizes = [8, 8], strides = [1, 1]} : vector<8x32xf32> to vector<8x8xf32>
      %cst_67 = arith.constant dense<0.000000e+00> : vector<8x8xf32>
      %129 = tpu.matmul %127, %128, %cst_67 {dimension_numbers = #tpu.dot_dimension_numbers<[1], [1], [0], [0], [0, 0, 1, 0], [], []>} : vector<8x8xf32>, vector<8x8xf32>, vector<8x8xf32> -> vector<8x8xf32>
      %cst_68 = arith.constant -1.000000e+30 : f32
      %130 = vector.broadcast %cst_68 : f32 to vector<8x8xf32>
      %131 = arith.select %33, %129, %130 : vector<8x8xi1>, vector<8x8xf32>
      %c0_69 = arith.constant 0 : index
      %c3 = arith.constant 3 : index
      %132 = vector.load %arg9[%c0_69, %c3] : memref<8x4xf32, #tpu.memory_space<vmem>>, vector<8x1xf32>
      %cst_70 = arith.constant dense<0xFF800000> : vector<8xf32>
      %133 = vector.multi_reduction <maximumf>, %131, %cst_70 [1] : vector<8x8xf32> to vector<8xf32>
      %134 = vector.shape_cast %133 : vector<8xf32> to vector<8x1xf32>
      %135 = arith.maximumf %132, %134 : vector<8x1xf32>
      %136 = arith.subf %132, %135 : vector<8x1xf32>
      %137 = math.exp %136 : vector<8x1xf32>
      %138 = vector.broadcast %135 : vector<8x1xf32> to vector<8x8xf32>
      %139 = arith.subf %131, %138 : vector<8x8xf32>
      %140 = math.exp %139 : vector<8x8xf32>
      %c0_71 = arith.constant 0 : index
      %c3_72 = arith.constant 3 : index
      %141 = vector.load %arg10[%c0_71, %c3_72] : memref<8x4xf32, #tpu.memory_space<vmem>>, vector<8x1xf32>
      %142 = arith.mulf %137, %141 : vector<8x1xf32>
      %cst_73 = arith.constant dense<0.000000e+00> : vector<8xf32>
      %143 = vector.multi_reduction <add>, %140, %cst_73 [1] : vector<8x8xf32> to vector<8xf32>
      %144 = vector.shape_cast %143 : vector<8xf32> to vector<8x1xf32>
      %145 = arith.addf %142, %144 : vector<8x1xf32>
      %c0_74 = arith.constant 0 : index
      %c3_75 = arith.constant 3 : index
      %146 = vector.load %arg10[%c0_74, %c3_75] : memref<8x4xf32, #tpu.memory_space<vmem>>, vector<8x1xf32>
      tpu.vector_store %arg10[%c0_74, %c3_75], %145 {strides = array<i32>} : memref<8x4xf32, #tpu.memory_space<vmem>>, vector<8x1xf32>,
      %c3_76 = arith.constant 3 : index
      %c0_77 = arith.constant 0 : index
      %c0_78 = arith.constant 0 : index
      %147 = vector.load %arg11[%c3_76, %c0_77, %c0_78] : memref<4x8x8xf32, #tpu.memory_space<vmem>>, vector<1x8x8xf32>
      %148 = vector.shape_cast %147 : vector<1x8x8xf32> to vector<8x8xf32>
      %149 = vector.broadcast %137 : vector<8x1xf32> to vector<8x8xf32>
      %150 = arith.mulf %149, %148 : vector<8x8xf32>
      %151 = vector.extract_strided_slice %16 {offsets = [0, 24], sizes = [8, 8], strides = [1, 1]} : vector<8x32xf32> to vector<8x8xf32>
      %cst_79 = arith.constant dense<0.000000e+00> : vector<8x8xf32>
      %152 = tpu.matmul %140, %151, %cst_79 {dimension_numbers = #tpu.dot_dimension_numbers<[1], [0], [0], [1], [0, 0, 1, 1], [], []>} : vector<8x8xf32>, vector<8x8xf32>, vector<8x8xf32> -> vector<8x8xf32>
      %153 = arith.addf %150, %152 : vector<8x8xf32>
      %c3_80 = arith.constant 3 : index
      %c0_81 = arith.constant 0 : index
      %c0_82 = arith.constant 0 : index
      %154 = vector.load %arg11[%c3_80, %c0_81, %c0_82] : memref<4x8x8xf32, #tpu.memory_space<vmem>>, vector<1x8x8xf32>
      %155 = vector.shape_cast %154 : vector<1x8x8xf32> to vector<8x8xf32>
      %156 = vector.shape_cast %153 : vector<8x8xf32> to vector<1x8x8xf32>
      tpu.vector_store %arg11[%c3_80, %c0_81, %c0_82], %156 {strides = array<i32>} : memref<4x8x8xf32, #tpu.memory_space<vmem>>, vector<1x8x8xf32>,
      %c0_83 = arith.constant 0 : index
      %c3_84 = arith.constant 3 : index
      %157 = vector.load %arg9[%c0_83, %c3_84] : memref<8x4xf32, #tpu.memory_space<vmem>>, vector<8x1xf32>
      tpu.vector_store %arg9[%c0_83, %c3_84], %135 {strides = array<i32>} : memref<8x4xf32, #tpu.memory_space<vmem>>, vector<8x1xf32>,
    } else {
    }
    %24 = arith.cmpi eq, %3, %5 : i32
    %25 = arith.extui %24 : i1 to i32
    %c0_i32_12 = arith.constant 0 : i32
    %26 = arith.cmpi ne, %25, %c0_i32_12 : i32
    scf.if %26 {
      %c0_13 = arith.constant 0 : index
      %c0_14 = arith.constant 0 : index
      %c0_15 = arith.constant 0 : index
      %27 = vector.load %arg11[%c0_13, %c0_14, %c0_15] : memref<4x8x8xf32, #tpu.memory_space<vmem>>, vector<1x8x8xf32>
      %28 = vector.shape_cast %27 : vector<1x8x8xf32> to vector<8x8xf32>
      %c0_16 = arith.constant 0 : index
      %c0_17 = arith.constant 0 : index
      %29 = vector.load %arg10[%c0_16, %c0_17] : memref<8x4xf32, #tpu.memory_space<vmem>>, vector<8x1xf32>
      %30 = tpu.reciprocal %29 {approx = true} : vector<8x1xf32> -> vector<8x1xf32>
      %31 = vector.broadcast %30 : vector<8x1xf32> to vector<8x8xf32>
      %32 = arith.mulf %28, %31 : vector<8x8xf32>
      %c1 = arith.constant 1 : index
      %c0_18 = arith.constant 0 : index
      %c0_19 = arith.constant 0 : index
      %33 = vector.load %arg11[%c1, %c0_18, %c0_19] : memref<4x8x8xf32, #tpu.memory_space<vmem>>, vector<1x8x8xf32>
      %34 = vector.shape_cast %33 : vector<1x8x8xf32> to vector<8x8xf32>
      %c0_20 = arith.constant 0 : index
      %c1_21 = arith.constant 1 : index
      %35 = vector.load %arg10[%c0_20, %c1_21] : memref<8x4xf32, #tpu.memory_space<vmem>>, vector<8x1xf32>
      %36 = tpu.reciprocal %35 {approx = true} : vector<8x1xf32> -> vector<8x1xf32>
      %37 = vector.broadcast %36 : vector<8x1xf32> to vector<8x8xf32>
      %38 = arith.mulf %34, %37 : vector<8x8xf32>
      %c2 = arith.constant 2 : index
      %c0_22 = arith.constant 0 : index
      %c0_23 = arith.constant 0 : index
      %39 = vector.load %arg11[%c2, %c0_22, %c0_23] : memref<4x8x8xf32, #tpu.memory_space<vmem>>, vector<1x8x8xf32>
      %40 = vector.shape_cast %39 : vector<1x8x8xf32> to vector<8x8xf32>
      %c0_24 = arith.constant 0 : index
      %c2_25 = arith.constant 2 : index
      %41 = vector.load %arg10[%c0_24, %c2_25] : memref<8x4xf32, #tpu.memory_space<vmem>>, vector<8x1xf32>
      %42 = tpu.reciprocal %41 {approx = true} : vector<8x1xf32> -> vector<8x1xf32>
      %43 = vector.broadcast %42 : vector<8x1xf32> to vector<8x8xf32>
      %44 = arith.mulf %40, %43 : vector<8x8xf32>
      %c3 = arith.constant 3 : index
      %c0_26 = arith.constant 0 : index
      %c0_27 = arith.constant 0 : index
      %45 = vector.load %arg11[%c3, %c0_26, %c0_27] : memref<4x8x8xf32, #tpu.memory_space<vmem>>, vector<1x8x8xf32>
      %46 = vector.shape_cast %45 : vector<1x8x8xf32> to vector<8x8xf32>
      %c0_28 = arith.constant 0 : index
      %c3_29 = arith.constant 3 : index
      %47 = vector.load %arg10[%c0_28, %c3_29] : memref<8x4xf32, #tpu.memory_space<vmem>>, vector<8x1xf32>
      %48 = tpu.reciprocal %47 {approx = true} : vector<8x1xf32> -> vector<8x1xf32>
      %49 = vector.broadcast %48 : vector<8x1xf32> to vector<8x8xf32>
      %50 = arith.mulf %46, %49 : vector<8x8xf32>
      %51 = tpu.concatenate %32, %38, %44, %50 in 1 : vector<8x8xf32>, vector<8x8xf32>, vector<8x8xf32>, vector<8x8xf32> -> vector<8x32xf32>
      %c0_30 = arith.constant 0 : index
      %c0_31 = arith.constant 0 : index
      %c0_32 = arith.constant 0 : index
      %52 = vector.load %arg8[%c0_30, %c0_31, %c0_32] : memref<1x8x32xf32, #tpu.memory_space<vmem>>, vector<1x8x32xf32>
      %53 = vector.shape_cast %52 : vector<1x8x32xf32> to vector<8x32xf32>
      %54 = vector.shape_cast %51 : vector<8x32xf32> to vector<1x8x32xf32>
      tpu.vector_store %arg8[%c0_30, %c0_31, %c0_32], %54 {strides = array<i32>} : memref<1x8x32xf32, #tpu.memory_space<vmem>>, vector<1x8x32xf32>,
    } else {
    }
    return
  }
  func.func @transform_0(%arg0: i32, %arg1: memref<2xi32, #tpu.memory_space<smem>>, %arg2: memref<2xi32, #tpu.memory_space<smem>>, %arg3: memref<2xi32, #tpu.memory_space<smem>>, %arg4: memref<2xi32, #tpu.memory_space<smem>>) -> (i32, i32, i32) {
    %0 = arith.index_cast %arg0 : i32 to index
    %1 = memref.load %arg1[%0] : memref<2xi32, #tpu.memory_space<smem>>
    %2 = arith.index_cast %arg0 : i32 to index
    %3 = memref.load %arg2[%2] : memref<2xi32, #tpu.memory_space<smem>>
    %c0_i32 = arith.constant 0 : i32
    %c0_i32_0 = arith.constant 0 : i32
    return %1, %3, %c0_i32 : i32, i32, i32
  }
  func.func @transform_1(%arg0: i32, %arg1: memref<2xi32, #tpu.memory_space<smem>>, %arg2: memref<2xi32, #tpu.memory_space<smem>>, %arg3: memref<2xi32, #tpu.memory_space<smem>>, %arg4: memref<2xi32, #tpu.memory_space<smem>>) -> (i32, i32, i32) {
    %0 = arith.index_cast %arg0 : i32 to index
    %1 = memref.load %arg1[%0] : memref<2xi32, #tpu.memory_space<smem>>
    %2 = arith.index_cast %arg0 : i32 to index
    %3 = memref.load %arg3[%2] : memref<2xi32, #tpu.memory_space<smem>>
    %c0_i32 = arith.constant 0 : i32
    %c0_i32_0 = arith.constant 0 : i32
    return %1, %3, %c0_i32 : i32, i32, i32
  }
  func.func @transform_2(%arg0: i32, %arg1: memref<2xi32, #tpu.memory_space<smem>>, %arg2: memref<2xi32, #tpu.memory_space<smem>>, %arg3: memref<2xi32, #tpu.memory_space<smem>>, %arg4: memref<2xi32, #tpu.memory_space<smem>>) -> (i32, i32, i32) {
    %0 = arith.index_cast %arg0 : i32 to index
    %1 = memref.load %arg1[%0] : memref<2xi32, #tpu.memory_space<smem>>
    %2 = arith.index_cast %arg0 : i32 to index
    %3 = memref.load %arg3[%2] : memref<2xi32, #tpu.memory_space<smem>>
    %c0_i32 = arith.constant 0 : i32
    %c0_i32_0 = arith.constant 0 : i32
    return %1, %3, %c0_i32 : i32, i32, i32
  }
  func.func @transform_3(%arg0: i32, %arg1: memref<2xi32, #tpu.memory_space<smem>>, %arg2: memref<2xi32, #tpu.memory_space<smem>>, %arg3: memref<2xi32, #tpu.memory_space<smem>>, %arg4: memref<2xi32, #tpu.memory_space<smem>>) -> (i32, i32, i32) {
    %0 = arith.index_cast %arg0 : i32 to index
    %1 = memref.load %arg1[%0] : memref<2xi32, #tpu.memory_space<smem>>
    %2 = arith.index_cast %arg0 : i32 to index
    %3 = memref.load %arg2[%2] : memref<2xi32, #tpu.memory_space<smem>>
    %c0_i32 = arith.constant 0 : i32
    %c0_i32_0 = arith.constant 0 : i32
    return %1, %3, %c0_i32 : i32, i32, i32
  }
}

module attributes {stable_mosaic.version = 11 : i64} {
  func.func @_linear_split_kernel(%arg0: i32, %arg1: memref<16x32xf32, #tpu.memory_space<vmem>>, %arg2: memref<32x32xf32, #tpu.memory_space<vmem>>, %arg3: memref<1x32xf32, #tpu.memory_space<vmem>>, %arg4: memref<16x32xf32, #tpu.memory_space<vmem>>) attributes {dimension_semantics = [#tpu.dimension_semantics<parallel>], iteration_bounds = array<i64: 1>, scalar_prefetch = 0 : i64, scratch_operands = 0 : i64, tpu.core_type = #tpu.core_type<tc>, window_params = [{transform_indices = @transform_0, window_bounds = array<i64: 16, 32>}, {pipeline_mode = #tpu.pipeline_mode<synchronous>, transform_indices = @transform_1, window_bounds = array<i64: 32, 32>}, {pipeline_mode = #tpu.pipeline_mode<synchronous>, transform_indices = @transform_2, window_bounds = array<i64: 1, 32>}, {transform_indices = @transform_3, window_bounds = array<i64: 16, 32>}]} {
    %c0 = arith.constant 0 : index
    %c0_0 = arith.constant 0 : index
    %0 = vector.load %arg1[%c0, %c0_0] : memref<16x32xf32, #tpu.memory_space<vmem>>, vector<16x32xf32>
    %c0_1 = arith.constant 0 : index
    %c0_2 = arith.constant 0 : index
    %1 = vector.load %arg2[%c0_1, %c0_2] : memref<32x32xf32, #tpu.memory_space<vmem>>, vector<32x32xf32>
    %cst = arith.constant dense<0.000000e+00> : vector<16x32xf32>
    %2 = tpu.matmul %0, %1, %cst {dimension_numbers = #tpu.dot_dimension_numbers<[1], [0], [0], [1], [0, 0, 1, 1], [], []>} : vector<16x32xf32>, vector<32x32xf32>, vector<16x32xf32> -> vector<16x32xf32>
    %c0_3 = arith.constant 0 : index
    %c0_4 = arith.constant 0 : index
    %3 = vector.load %arg3[%c0_3, %c0_4] : memref<1x32xf32, #tpu.memory_space<vmem>>, vector<1x32xf32>
    %4 = vector.broadcast %3 : vector<1x32xf32> to vector<16x32xf32>
    %5 = arith.addf %2, %4 : vector<16x32xf32>
    %c0_5 = arith.constant 0 : index
    %c0_6 = arith.constant 0 : index
    %6 = vector.load %arg4[%c0_5, %c0_6] : memref<16x32xf32, #tpu.memory_space<vmem>>, vector<16x32xf32>
    tpu.vector_store %arg4[%c0_5, %c0_6], %5 {strides = array<i32>} : memref<16x32xf32, #tpu.memory_space<vmem>>, vector<16x32xf32>,
    return
  }
  func.func @transform_0(%arg0: i32) -> (i32, i32) {
    %c0_i32 = arith.constant 0 : i32
    %c0_i32_0 = arith.constant 0 : i32
    return %arg0, %c0_i32 : i32, i32
  }
  func.func @transform_1(%arg0: i32) -> (i32, i32) {
    %c0_i32 = arith.constant 0 : i32
    %c0_i32_0 = arith.constant 0 : i32
    %c0_i32_1 = arith.constant 0 : i32
    return %c0_i32, %c0_i32_0 : i32, i32
  }
  func.func @transform_2(%arg0: i32) -> (i32, i32) {
    %c0_i32 = arith.constant 0 : i32
    %c0_i32_0 = arith.constant 0 : i32
    %c0_i32_1 = arith.constant 0 : i32
    return %c0_i32, %c0_i32_0 : i32, i32
  }
  func.func @transform_3(%arg0: i32) -> (i32, i32) {
    %c0_i32 = arith.constant 0 : i32
    %c0_i32_0 = arith.constant 0 : i32
    return %arg0, %c0_i32 : i32, i32
  }
}

</mosaic_0001>

<bundles_post_ra>
// kernel: causal_self_attention.3
= control target key start
LH: loop header
LB: loop body
LE: loop exit
PB: predicated region body
PF: predicated region fallthrough
CT: control target
= control target key end

     0   :  { %11 = vsyncpa [#allocation3], 0  ;;  %s621_s0 = inlined_call_operand.hbm [shape: f32[16,32], index: 0, kind: input, shape index: {}]   ;;  %s622_s1 = inlined_call_operand.hbm [shape: f32[32,96], index: 1, kind: input, shape index: {}]   ;;  %s623_s2 = inlined_call_operand.vmem [shape: f32[1,96], index: 2, kind: input, shape index: {}]   ;;  %s624_s3 = inlined_call_operand.vmem [shape: f32[16,32], index: 3, kind: output, shape index: {0}]   ;;  %s625_s4 = inlined_call_operand.vmem [shape: f32[16,32], index: 4, kind: output, shape index: {1}]   ;;  %s626_s5 = inlined_call_operand.vmem [shape: f32[16,32], index: 5, kind: output, shape index: {2}]  }
   0x1   :  { %12 = vsyncpa [#allocation5], 0  ;;  %s528_s18 = smov [#allocation2]   ;;  %s480_s22 = scalar_lea.hbm %s621_s0, 256 }
   0x2   :  { %s18_s19 = sshll.u32 %s528_s18, 4  ;;  %p481_p0 = scmp.ne.s32.totalorder %s621_s0, %s480_s22  ;;  %s19_s19 = int_to_ptr.vmem [resolvable:$true] %s18_s19 }
   0x3   :  { %p484_p1 = scmp.lt.u32.totalorder %s480_s22, %s621_s0 }
   0x5   :  { %p486_p2 = pnand %p484_p1, %p481_p0 }
   0x7   :  { %489 = shalt.err (!%p486_p2)
}
   0x8   :  { %s490_s27 = scalar_lea.vmem %s19_s19, 256  ;;  %p495_p4 = scmp.lt.s32.totalorder %s19_s19, %s19_s19 }
   0x9   :  { %p491_p3 = scmp.ne.s32.totalorder %s19_s19, %s490_s27  ;;  %p496_p5 = scmp.lt.s32.totalorder %s490_s27, %s490_s27 }
   0xb   :  { %p497_p6 = por %p496_p5, %p495_p4 }
   0xd   :  { %p498_p7 = pnand %p497_p6, %p491_p3 }
   0xf   :  { %501 = shalt.err (!%p498_p7)
}
  0x10   :  { %s529_s28 = smov 128   ;;  %s530_s29 = smov 8  }
  0x11   :  { %24 = dma.hbm_to_vmem [thread:$0]  %s621_s0, 256, %s19_s19, [#allocation3], %s529_s28, %s529_s28, %s530_s29  }
  0x12   :  { %s531_s7 = smov [#allocation4]   ;;  %s502_s11 = scalar_lea.hbm %s622_s1, 512 }
  0x13   :  { %s30_s8 = sshll.u32 %s531_s7, 4  ;;  %p503_p8 = scmp.ne.s32.totalorder %s622_s1, %s502_s11  ;;  %s31_s8 = int_to_ptr.vmem [resolvable:$true] %s30_s8 }
  0x14   :  { %p506_p9 = scmp.lt.u32.totalorder %s502_s11, %s622_s1 }
  0x16   :  { %p508_p10 = pnand %p506_p9, %p503_p8 }
  0x18   :  { %511 = shalt.err (!%p508_p10)
}
  0x19   :  { %s512_s16 = scalar_lea.vmem %s31_s8, 512  ;;  %p517_p12 = scmp.lt.s32.totalorder %s31_s8, %s31_s8 }
  0x1a   :  { %p513_p11 = scmp.ne.s32.totalorder %s31_s8, %s512_s16  ;;  %p518_p13 = scmp.lt.s32.totalorder %s512_s16, %s512_s16 }
  0x1c   :  { %p519_p0 = por %p518_p13, %p517_p12 }
  0x1e   :  { %p520_p1 = pnand %p519_p0, %p513_p11 }
  0x20   :  { %523 = shalt.err (!%p520_p1)
}
  0x21   :  { %36 = dma.hbm_to_vmem [thread:$0]  %s622_s1, 512, %s31_s8, [#allocation5], %s529_s28, %s529_s28, %s530_s29  }
  0x22   :  { %524 = dma.done.wait [#allocation3], 256  }
  0x23   :  { %525 = vsyncadd [#allocation3], 4294967040 }
  0x24   :  { %526 = dma.done.wait [#allocation5], 512  }
  0x25   :  { %527 = vsyncadd [#allocation5], 4294966784  ;;  %vm58_vm0 = vcmask 261120   ;;  %v144_v0 = vld [vmem:[#allocation4] sm:$0xff]  ;;  %v145_v1 = vld [vmem:[#allocation4 + $0x8] sm:$0xff]  ;;  %s532_s18 = smov 96  }
  0x26   :  { %v146_v2 = vld [vmem:[#allocation4 + $0x10] sm:$0xff]  ;;  %v460_v3 = vpack.i.bf16 %v145_v1, %v144_v0  ;;  %v147_v4 = vld [vmem:[#allocation4 + $0x18] sm:$0xff]  ;;  %v430_v5 = vpack.c.bf16 %v145_v1, %v144_v0  ;;  %s533_s1 = smov 64  }
  0x27   :  { %v45_v6 = vld [vmem:[#allocation2] sm:$0xff]  ;;  %v470_v7 = vpack.i.bf16 %v147_v4, %v146_v2  ;;  %v434_v8 = vpack.c.bf16 %v147_v4, %v146_v2  ;;  %v46_v9 = vld [vmem:[#allocation2 + $0x8] sm:$0xff] }
  0x28   :  { %405 = vmatprep.mubr.msk.f32.mxu0 %vm58_vm0, %v45_v6  ;;  %416 = vmatprep.mubr.msk.f32.mxu1 %vm58_vm0, %v45_v6  ;;  %v376_v10 = vld [vmem:[%s623_s2] ss:$0 sm:$0xff] }
  0x29   :  { %461 = vrot.lane.b32.xlu0 %v460_v3, %s532_s18  ;;  %431 = vmatprep.subr.bf16.mxu0 %v430_v5 }
  0x2a   :  { %471 = vrot.lane.b32.xlu1 %v470_v7, %s532_s18  ;;  %433 = vmatpush3.bf16.msra.mxu0 %v430_v5 }
  0x2b   :  { %435 = vmatprep.subr.bf16.mxu0 %v434_v8 }
  0x2d   :  { %466 = vrot.lane.b32.xlu0 %v460_v3, %s533_s1 }
  0x2e   :  { %476 = vrot.lane.b32.xlu1 %v470_v7, %s533_s1  ;;  %437 = vmatpush3.bf16.msra.mxu0 %v434_v8 }
  0x31   :  { %406 = vmatmul.mubr.msk.f32.vlgmr.msra.gmra.mrb[0].mxu0 %vm58_vm0, %v46_v9  ;;  %170 = vrot.lane.b32.xlu0 %v376_v10, %s532_s18 }
  0x32   :  { %427 = vmatprep.mubr.msk.f32.mxu0 %vm58_vm0, %v45_v6  ;;  %276 = vrot.lane.b32.xlu1 %v376_v10, %s533_s1 }
  0x9b   :  { %v462_v11 = vpop.permute.xlu0 %461 }
  0x9c   :  { %v464_v12 = vunpack.i.h.bf16 %v462_v11  ;;  %v463_v13 = vunpack.i.l.bf16 %v462_v11  ;;  %v472_v14 = vpop.permute.xlu1 %471 }
  0x9d   :  { %v474_v15 = vunpack.i.h.bf16 %v472_v14  ;;  %v473_v16 = vunpack.i.l.bf16 %v472_v14 }
  0x9e   :  { %v438_v17 = vpack.c.bf16 %v464_v12, %v463_v13 }
  0x9f   :  { %v442_v18 = vpack.c.bf16 %v474_v15, %v473_v16  ;;  %v467_v19 = vpop.permute.xlu0 %466 }
  0xa0   :  { %v469_v20 = vunpack.i.h.bf16 %v467_v19  ;;  %v468_v21 = vunpack.i.l.bf16 %v467_v19  ;;  %439 = vmatprep.subr.bf16.mxu1 %v438_v17  ;;  %v477_v22 = vpop.permute.xlu1 %476 }
  0xa1   :  { %441 = vmatpush3.bf16.msra.mxu1 %v438_v17  ;;  %v479_v23 = vunpack.i.h.bf16 %v477_v22  ;;  %v478_v24 = vunpack.i.l.bf16 %v477_v22 }
  0xa2   :  { %v446_v25 = vpack.c.bf16 %v469_v20, %v468_v21  ;;  %443 = vmatprep.subr.bf16.mxu1 %v442_v18 }
  0xa3   :  { %v450_v26 = vpack.c.bf16 %v479_v23, %v478_v24  ;;  %v171_v33 = vpop.permute.xlu0 %170 }
  0xa4   :  { %447 = vmatprep.subr.bf16.mxu0 %v446_v25  ;;  %v277_v37 = vpop.permute.xlu1 %276 }
  0xa5   :  { %445 = vmatpush3.bf16.msra.mxu1 %v442_v18  ;;  %449 = vmatpush3.bf16.msra.mxu0 %v446_v25 }
  0xa6   :  { %451 = vmatprep.subr.bf16.mxu0 %v450_v26 }
  0xa8   :  { %417 = vmatmul.mubr.msk.f32.vlgmr.msra.gmra.mrb[0].mxu1 %vm58_vm0, %v46_v9 }
  0xa9   :  { %453 = vmatpush3.bf16.msra.mxu0 %v450_v26 }
  0xac   :  { %428 = vmatmul.mubr.msk.f32.vlgmr.msra.gmra.mrb[2].mxu0 %vm58_vm0, %v46_v9 }
 0x104   :  { %v407_v27 = vpop.f32.mrb[0].mxu0 }
 0x105   :  { %v137_v28 = vadd.f32 %v407_v27, %v376_v10  ;;  %v131_v29 = vpop.f32.mrb[1].mxu0 }
 0x106   :  { %v132_v30 = vadd.f32 %v376_v10, %v131_v29 }
 0x107   :  { %v141_v31 = vmul.f32 0.35355338, %v137_v28 }
 0x108   :  { %v140_v32 = vmul.f32 0.35355338, %v132_v30 }
 0x109   :  { %143 = vst.msk [vmem:[%s624_s3 + $0x8] sm:$0xff] %vm58_vm0, %v141_v31 }
 0x10a   :  { %142 = vst.msk [vmem:[%s624_s3] sm:$0xff] %vm58_vm0, %v140_v32 }
 0x17b   :  { %v418_v34 = vpop.f32.mrb[0].mxu1 }
 0x17c   :  { %v245_v35 = vadd.f32 %v418_v34, %v171_v33  ;;  %v239_v36 = vpop.f32.mrb[1].mxu1 }
 0x17d   :  { %v240_v38 = vadd.f32 %v239_v36, %v171_v33 }
 0x17e   :  { %249 = vst.msk [vmem:[%s625_s4 + $0x8] sm:$0xff] %vm58_vm0, %v245_v35 }
 0x17f   :  { %248 = vst.msk [vmem:[%s625_s4] sm:$0xff] %vm58_vm0, %v240_v38  ;;  %v429_v39 = vpop.f32.mrb[2].mxu0 }
 0x180   :  { %v351_v40 = vadd.f32 %v429_v39, %v277_v37  ;;  %v345_v41 = vpop.f32.mrb[3].mxu0 }
 0x181   :  { %v346_v42 = vadd.f32 %v345_v41, %v277_v37 }
 0x182   :  { %355 = vst.msk [vmem:[%s626_s5 + $0x8] sm:$0xff] %vm58_vm0, %v351_v40 }
 0x183   :  { %354 = vst.msk [vmem:[%s626_s5] sm:$0xff] %vm58_vm0, %v346_v42 }
 0x184   :  { %368 = vsyncpa [#allocation3], 1 }
 0x185   :  { %369 = vsyncpa [#allocation5], 1 }

// kernel: causal_self_attention.5
= control target key start
LH: loop header
LB: loop body
LE: loop exit
PB: predicated region body
PF: predicated region fallthrough
CT: control target
= control target key end

     0   :  { %vm28_vm0 = vcmask 261120   ;;  %s243_s0 = inlined_call_operand.vmem [shape: f32[16,32], index: 0, kind: input, shape index: {}]   ;;  %s244_s1 = inlined_call_operand.vmem [shape: f32[32,32], index: 1, kind: input, shape index: {}]   ;;  %s245_s2 = inlined_call_operand.vmem [shape: f32[1,32], index: 2, kind: input, shape index: {}]   ;;  %s246_s3 = inlined_call_operand.hbm [shape: f32[16,32], index: 3, kind: output, shape index: {}]  }
   0x1   :  { %v17_v0 = vld [vmem:[%s244_s1] sm:$0xff]  ;;  %v18_v1 = vld [vmem:[%s244_s1 + $0x8] sm:$0xff]  ;;  %v19_v2 = vld [vmem:[%s244_s1 + $0x10] sm:$0xff] }
   0x2   :  { %v148_v3 = vpack.c.bf16 %v18_v1, %v17_v0  ;;  %v20_v4 = vld [vmem:[%s244_s1 + $0x18] sm:$0xff]  ;;  %v15_v5 = vld [vmem:[%s243_s0] sm:$0xff] }
   0x3   :  { %v152_v6 = vpack.c.bf16 %v20_v4, %v19_v2  ;;  %145 = vmatprep.mubr.msk.f32.mxu0 %vm28_vm0, %v15_v5 }
   0x4   :  { %8 = vsyncpa [#allocation3], 0  ;;  %149 = vmatprep.subr.bf16.mxu0 %v148_v3  ;;  %v16_v7 = vld [vmem:[%s243_s0 + $0x8] sm:$0xff]  ;;  %v128_v8 = vld [vmem:[%s245_s2] ss:$0 sm:$0xff]  ;;  %s183_s25 = smov [#allocation2]  }
   0x5   :  { %151 = vmatpush3.bf16.msra.mxu0 %v148_v3  ;;  %s117_s26 = sshll.u32 %s183_s25, 4  ;;  %s118_s26 = int_to_ptr.vmem [resolvable:$true] %s117_s26 }
   0x6   :  { %153 = vmatprep.subr.bf16.mxu0 %v152_v6  ;;  %s159_s27 = scalar_lea.vmem %s118_s26, 256  ;;  %p164_p1 = scmp.lt.s32.totalorder %s118_s26, %s118_s26 }
   0x7   :  { %p160_p0 = scmp.ne.s32.totalorder %s118_s26, %s159_s27  ;;  %p165_p2 = scmp.lt.s32.totalorder %s159_s27, %s159_s27 }
   0x9   :  { %155 = vmatpush3.bf16.msra.mxu0 %v152_v6  ;;  %p166_p3 = por %p165_p2, %p164_p1 }
   0xb   :  { %p167_p4 = pnand %p166_p3, %p160_p0 }
   0xc   :  { %146 = vmatmul.mubr.msk.f32.vlgmr.msra.gmra.mrb[0].mxu0 %vm28_vm0, %v16_v7 }
  0xdf   :  { %v147_v9 = vpop.f32.mrb[0].mxu0 }
  0xe0   :  { %v107_v10 = vadd.f32 %v147_v9, %v128_v8  ;;  %v101_v11 = vpop.f32.mrb[1].mxu0 }
  0xe1   :  { %v102_v12 = vadd.f32 %v128_v8, %v101_v11 }
  0xe2   :  { %111 = vst.msk [vmem:[#allocation2 + $0x8] sm:$0xff] %vm28_vm0, %v107_v10 }
  0xe3   :  { %110 = vst.msk [vmem:[#allocation2] sm:$0xff] %vm28_vm0, %v102_v12 }
  0xe4   :  { %170 = shalt.err (!%p167_p4)
}
  0xe5   :  { %s171_s28 = scalar_lea.hbm %s246_s3, 256 }
  0xe6   :  { %p172_p5 = scmp.ne.s32.totalorder %s246_s3, %s171_s28  ;;  %p175_p6 = scmp.lt.u32.totalorder %s171_s28, %s246_s3 }
  0xe8   :  { %p177_p7 = pnand %p175_p6, %p172_p5 }
  0xea   :  { %180 = shalt.err (!%p177_p7)
}
  0xeb   :  { %s184_s6 = smov 128   ;;  %s185_s7 = smov 8  }
  0xec   :  { %123 = dma.vmem_to_hbm [thread:$0]  %s118_s26, 256, %s246_s3, [#allocation3], %s184_s6, %s184_s6, %s185_s7  }
  0xed   :  { %181 = dma.done.wait [#allocation3], 256  }
  0xee   :  { %182 = vsyncadd [#allocation3], 4294967040 }
  0xef   :  { %127 = vsyncpa [#allocation3], 1 }

// kernel: causal_self_attention.4
= control target key start
LH: loop header
LB: loop body
LE: loop exit
PB: predicated region body
PF: predicated region fallthrough
CT: control target
= control target key end

     0   :  { %s2682_s0 = inlined_call_operand.vmem [shape: s32[2], index: 0, kind: input, shape index: {}]   ;;  %s2683_s4 = inlined_call_operand.vmem [shape: f32[2,8,32], index: 4, kind: input, shape index: {}]   ;;  %s2684_s5 = inlined_call_operand.vmem [shape: f32[2,8,32], index: 5, kind: input, shape index: {}]   ;;  %s2685_s6 = inlined_call_operand.vmem [shape: f32[2,8,32], index: 6, kind: input, shape index: {}]   ;;  %s2686_s7 = inlined_call_operand.vmem [shape: f32[2,8,32], index: 7, kind: output, shape index: {}]   ;;  %s2687_s1 = inlined_call_operand.vmem [shape: s32[2], index: 1, kind: input, shape index: {}, may-alias: {1,2,3}]   ;;  %s2688_s2 = inlined_call_operand.vmem [shape: s32[2], index: 2, kind: input, shape index: {}, may-alias: {1,2,3}]   ;;  %s2689_s3 = inlined_call_operand.vmem [shape: s32[2], index: 3, kind: input, shape index: {}, may-alias: {1,2,3}]  }
   0x1   :  { %s12_s26 = sshll.u32 %s2682_s0, 4  ;;  %s16_s29 = sshll.u32 %s2687_s1, 4  ;;  %s13_s26 = int_to_ptr.vmem [resolvable:$true] %s12_s26  ;;  %s17_s29 = int_to_ptr.vmem [resolvable:$true] %s16_s29 }
   0x2   :  { %s2266_s30 = scalar_lea.vmem %s13_s26, 16  ;;  %p2271_p1 = scmp.lt.s32.totalorder %s13_s26, %s13_s26 }
   0x3   :  { %p2267_p0 = scmp.ne.s32.totalorder %s13_s26, %s2266_s30  ;;  %p2272_p2 = scmp.lt.s32.totalorder %s2266_s30, %s2266_s30 }
   0x5   :  { %p2273_p3 = por %p2272_p2, %p2271_p1 }
   0x7   :  { %p2274_p4 = pnand %p2273_p3, %p2267_p0 }
   0x9   :  { %2277 = shalt.err (!%p2274_p4)  }
   0xa   :  { %s2324_s8 = smov [#allocation6]   ;;  %s2278_s9 = scalar_lea.vmem %s17_s29, 16 }
   0xb   :  { %15 = dma.vmem_to_smem %s13_s26, 16, %s2324_s8, [#allocation5] }
   0xc   :  { %p2279_p5 = scmp.ne.s32.totalorder %s17_s29, %s2278_s9  ;;  %p2283_p6 = scmp.lt.s32.totalorder %s17_s29, %s17_s29 }
   0xd   :  { %p2284_p7 = scmp.lt.s32.totalorder %s2278_s9, %s2278_s9 }
   0xf   :  { %p2285_p8 = por %p2284_p7, %p2283_p6 }
  0x11   :  { %p2286_p9 = pnand %p2285_p8, %p2279_p5 }
  0x13   :  { %2289 = shalt.err (!%p2286_p9)  }
  0x14   :  { %s2325_s0 = smov [#allocation7]   ;;  %s20_s11 = sshll.u32 %s2688_s2, 4  ;;  %s21_s11 = int_to_ptr.vmem [resolvable:$true] %s20_s11 }
  0x15   :  { %19 = dma.vmem_to_smem %s17_s29, 16, %s2325_s0, [#allocation5] }
  0x16   :  { %s24_s14 = sshll.u32 %s2689_s3, 4  ;;  %s2290_s15 = scalar_lea.vmem %s21_s11, 16  ;;  %s25_s14 = int_to_ptr.vmem [resolvable:$true] %s24_s14 }
  0x17   :  { %p2291_p10 = scmp.ne.s32.totalorder %s21_s11, %s2290_s15  ;;  %p2295_p11 = scmp.lt.s32.totalorder %s21_s11, %s21_s11 }
  0x18   :  { %p2296_p12 = scmp.lt.s32.totalorder %s2290_s15, %s2290_s15 }
  0x1a   :  { %p2297_p13 = por %p2296_p12, %p2295_p11 }
  0x1c   :  { %p2298_p0 = pnand %p2297_p13, %p2291_p10 }
  0x1e   :  { %2301 = shalt.err (!%p2298_p0)  }
  0x1f   :  { %s2326_s16 = smov [#allocation8]   ;;  %s2302_s17 = scalar_lea.vmem %s25_s14, 16 }
  0x20   :  { %23 = dma.vmem_to_smem %s21_s11, 16, %s2326_s16, [#allocation5] }
  0x21   :  { %p2303_p1 = scmp.ne.s32.totalorder %s25_s14, %s2302_s17  ;;  %p2307_p2 = scmp.lt.s32.totalorder %s25_s14, %s25_s14 }
  0x22   :  { %p2308_p3 = scmp.lt.s32.totalorder %s2302_s17, %s2302_s17 }
  0x24   :  { %p2309_p4 = por %p2308_p3, %p2307_p2 }
  0x26   :  { %p2310_p5 = pnand %p2309_p4, %p2303_p1 }
  0x28   :  { %2313 = shalt.err (!%p2310_p5)  }
  0x29   :  { %s2327_s2 = smov [#allocation9]  }
  0x2a   :  { %27 = dma.vmem_to_smem %s25_s14, 16, %s2327_s2, [#allocation5] }
  0x2b   :  { %2318 = dma.done.wait [#allocation5], 64 }
  0x2c   :  { %2319 = vsyncadd [#allocation5], 4294967232 }
  0x2d   :  { %29 = sfence }
  0x2e   :  { %s2407_s3 = smov 0  }
  0x2f LB: > { %s2017_s18 = sadd.s32 4294967295, %s2322_s3   ;;  %p2021_p6 = scmp.ge.s32.totalorder %s2322_s3, 1  ;;  %s2322_s3 = sphi %s2407_s3, %s35_s3  }
  0x30   : > { %p221_p7 = scmp.lt.s32.totalorder %s2322_s3, 3 }
  0x32   : > { %p222_p8 = pnand %p2021_p6, %p221_p7 }
  0x33   : > { %s271_s19 = sld [smem:[#allocation6 + %s2017_s18]] (!%p222_p8) }
  0x34   : > { %225 = sbr.rel (%p222_p8) target bundleno = 2842 (0xb1a), region = 32  ;;  %s272_s20 = sld [smem:[#allocation7 + %s2017_s18]] (!%p222_p8) }
  0x35   : > { %s282_s21 = sld [smem:[#allocation6 + %s2017_s18]] (!%p222_p8) }
  0x36   : > { %s283_s22 = sld [smem:[#allocation8 + %s2017_s18]] (!%p222_p8) }
  0x37   : > { %s293_s23 = sld [smem:[#allocation6 + %s2017_s18]] (!%p222_p8) }
  0x38   : > { %s294_s24 = sld [smem:[#allocation8 + %s2017_s18]] (!%p222_p8) }
  0x39   : > { %s304_s25 = sld [smem:[#allocation6 + %s2017_s18]] (!%p222_p8)  ;;  %p273_p9 = scmp.lt.s32.totalorder (!%p222_p8), %s271_s19, 1 }
  0x3a   : > { %s2415_s26 = sld [smem:[#allocation7 + %s2017_s18]] (!%p222_p8)  ;;  %p275_p10 = scmp.lt.s32.totalorder (!%p222_p8), %s272_s20, 0 }
  0x3b   : > { %s315_s27 = sld [smem:[#allocation7 + %s2017_s18]]  ;;  %p284_p11 = scmp.lt.s32.totalorder %s282_s21, 1 }
  0x3c   : > { %s2417_s28 = sld [smem:[#allocation8 + %s2017_s18]]  ;;  %p286_p12 = scmp.lt.s32.totalorder %s283_s22, 0 }
  0x3d   : > { %s2419_s29 = sld [smem:[#allocation9 + %s2017_s18]]  ;;  %s2691_s19 = smov (!%p273_p9, %s271_s19), 1 }
  0x3e   : > { %s2693_s20 = smov (!%p275_p10, %s272_s20), 0  ;;  %s2695_s21 = smov (!%p284_p11, %s282_s21), 1 }
  0x3f   : > { %s277_s30 = sadd.s32 %s2693_s20, %s2691_s19  ;;  %p295_p13 = scmp.lt.s32.totalorder %s293_s23, 1 }
  0x40   : > { %s2421_s8 = sshll.u32 %s277_s30, 3  ;;  %p297_p0 = scmp.lt.s32.totalorder %s294_s24, 0 }
  0x41   : > { %s279_s1 = scalar_lea.vmem %s2683_s4, %s2421_s8  ;;  %p306_p1 = scmp.lt.s32.totalorder %s304_s25, 1 }
  0x42   : > { %s2697_s22 = smov (!%p286_p12, %s283_s22), 0  ;;  %s2699_s23 = smov (!%p295_p13, %s293_s23), 1 }
  0x43   : > { %s288_s10 = sadd.s32 %s2697_s22, %s2695_s21  ;;  %p308_p2 = scmp.lt.s32.totalorder %s2415_s26, 0 }
  0x44   : > { %s2023_s11 = sshll.u32 %s288_s10, 3  ;;  %s2428_s12 = sshll.u32 %s315_s27, 3 }
  0x45   : > { %s290_s15 = scalar_lea.vmem %s2684_s5, %s2023_s11  ;;  %s2027_s16 = sshll.u32 %s2417_s28, 3 }
  0x46   : > { %s2701_s24 = smov (!%p297_p0, %s294_s24), 0  ;;  %s2703_s25 = smov (!%p306_p1, %s304_s25), 1 }
  0x47   : > { %s299_s17 = sadd.s32 %s2701_s24, %s2699_s23  ;;  %s2705_s26 = smov (!%p308_p2, %s2415_s26), 0 }
  0x48   : > { %s2024_s2 = sshll.u32 %s299_s17, 3  ;;  %s310_s30 = sadd.s32 %s2705_s26, %s2703_s25 }
  0x49   : > { %s301_s20 = scalar_lea.vmem %s2685_s6, %s2024_s2  ;;  %s2438_s21 = sshll.u32 %s310_s30, 3 }
  0x4a   : > { %s312_s9 = scalar_lea.vmem %s2686_s7, %s2438_s21  ;;  %p2028_p3 = scmp.ne.s32.totalorder %s2417_s28, 0 }
  0x4b   : > { %vm324_vm0 = vcmask (!%p2028_p3), 31744   ;;  %vm327_vm1 = vcmask (!%p2028_p3), 64512   ;;  %v2328_v0 = vmov (!%p2028_p3), -1e+30   ;;  %v2329_v1 = vmov (!%p2028_p3), 0.0  }
  0x4c   : > { %323 = sbr.rel (%p2028_p3) target bundleno = 83 (0x53), region = 36  ;;  %325 = vst.msk [vmem:[#allocation2] sm:$0xff] (!%p2028_p3), %vm324_vm0, %v2328_v0  ;;  %326 = vst.msk [vmem:[#allocation3] sm:$0xff] (!%p2028_p3), %vm324_vm0, %v2329_v1 }
  0x4d   : > { %328 = vst.msk [vmem:[#allocation4] sm:$0xff] (!%p2028_p3), %vm327_vm1, %v2329_v1  ;;  %329 = vst.msk [vmem:[#allocation4 + $0x8] sm:$0xff] (!%p2028_p3), %vm327_vm1, %v2329_v1 }
  0x4e   : > { %330 = vst.msk [vmem:[#allocation4 + $0x10] sm:$0xff] (!%p2028_p3), %vm327_vm1, %v2329_v1  ;;  %331 = vst.msk [vmem:[#allocation4 + $0x18] sm:$0xff] (!%p2028_p3), %vm327_vm1, %v2329_v1 }
  0x53 PF: > { %v2450_v2 = vld [vmem:[%s279_s1] sm:$0xff]  ;;  %s2458_s25 = sadd.s32 7, %s2027_s16 }
  0x54   : > { %v2452_v3 = vld [vmem:[%s290_s15] sm:$0xff]  ;;  %p2029_p4 = scmp.gt.s32.totalorder %s2458_s25, %s2428_s12 }
  0x55   : > { %v2454_v4 = vld [vmem:[%s301_s20] sm:$0xff]  ;;  %vm340_vm2 = vcmask (!%p2029_p4), 64512   ;;  %v2330_v5 = vmov (!%p2029_p4), 0.0   ;;  %vm2331_vm3 = vmmov (!%p2029_p4), 0   ;;  %v2332_v9 = vmov (!%p2029_p4), 0   ;;  %s2333_s26 = smov (!%p2029_p4), 120  }
  0x56   : > { %339 = sbr.rel (%p2029_p4) target bundleno = 1329 (0x531), region = 40  ;;  %2090 = vmatprep.subr.mxu0 (!%p2029_p4), %v2330_v5  ;;  %2092 = vmatprep.mubr.msk.f32.mxu0 (!%p2029_p4), %vm2331_vm3, %v2330_v5  ;;  %s2334_s8 = smov (!%p2029_p4), 112   ;;  %v417_v10 = vld [vmem:[#allocation2] sm:$0xff] (!%p2029_p4)  ;;  %vm439_vm4 = vcmask (!%p2029_p4), 7168   ;;  %v2336_v35 = vmov (!%p2029_p4), 1   ;;  %v2337_v36 = vmov (!%p2029_p4), 2  }
  0x57   : > { %2091 = vmatpush3.xpose.msk.msra.mxu0 (!%p2029_p4), %vm340_vm2, %v2452_v3  ;;  %2095 = vmatprep.subr.mxu1 (!%p2029_p4), %v2330_v5  ;;  %s2335_s0 = smov (!%p2029_p4), 104   ;;  %vm624_vm5 = vcmask (!%p2029_p4), 15368   ;;  %v2338_v42 = vmov (!%p2029_p4), 3   ;;  %vm814_vm6 = vcmask (!%p2029_p4), 23568   ;;  %vm1003_vm7 = vcmask (!%p2029_p4), 31768   ;;  %v441_v61 = vld [vmem:[#allocation4] sm:$0xff] (!%p2029_p4) }
  0x58   : > { %2096 = vmatpush3.msra.mxu1 (!%p2029_p4), %v2454_v4  ;;  %2097 = vmatprep.mubr.msk.f32.mxu1 (!%p2029_p4), %vm2331_vm3, %v2330_v5 }
  0x59   : > { %2100 = vmatprep.subr.mxu1 (!%p2029_p4), %v2330_v5  ;;  %2105 = vmatprep.subr.mxu0 (!%p2029_p4), %v2330_v5 }
  0x5a   : > { %2093 = vmatmul.mubr.msk.f32.vlgmr.msra.gmra.mrb[0].mxu0 (!%p2029_p4), %vm340_vm2, %v2450_v2  ;;  %2209 = vset.pattern.permute.xlu0 (!%p2029_p4), %v2332_v9 }
  0x5b   : > { %2107 = vmatprep.mubr.msk.f32.mxu0 (!%p2029_p4), %vm2331_vm3, %v2330_v5  ;;  %526 = vrot.lane.b32.xlu1 (!%p2029_p4), %v2452_v3, %s2333_s26 }
  0x5c   : > { %2210 = vset.pattern.permute.xlu1 (!%p2029_p4), %v2336_v35 }
  0x5f   : > { %524 = vrot.lane.b32.xlu1 %v2450_v2, %s2333_s26 }
  0x63   : > { %716 = vrot.lane.b32.xlu1 %v2452_v3, %s2334_s8 }
  0x67   : > { %714 = vrot.lane.b32.xlu1 %v2450_v2, %s2334_s8 }
  0x6b   : > { %905 = vrot.lane.b32.xlu1 %v2452_v3, %s2335_s0 }
  0x6f   : > { %903 = vrot.lane.b32.xlu1 %v2450_v2, %s2335_s0 }
  0xcd   : > { %v527_v14 = vpop.permute.xlu1 %526 }
  0xd1   : > { %v525_v18 = vpop.permute.xlu1 %524 }
  0xd5   : > { %v717_v19 = vpop.permute.xlu1 %716 }
  0xd9   : > { %v715_v21 = vpop.permute.xlu1 %714 }
  0xdd   : > { %v906_v22 = vpop.permute.xlu1 %905 }
  0xe1   : > { %v904_v23 = vpop.permute.xlu1 %903 }
 0x12d   : > { %v413_v6 = vpop.f32.mrb[0].mxu0 }
 0x12e   : > { %v2094_v7 = vpop.f32.mrb[1].mxu0  ;;  %v418_v8 = vsel %vm340_vm2, %v413_v6, -inf }
 0x12f   : > { %419 = vmax.xlane.f32.xlu0 %v418_v8 }
 0x1bc   : > { %v420_v11 = vpop.xlane.xlu0 %419 }
 0x1bd   : > { %v421_v12 = vmax.f32 %v417_v10, %v420_v11 }
 0x1bf   : > { %v422_v13 = vsub.f32 %v417_v10, %v421_v12  ;;  %523 = vst.msk [vmem:[#allocation2] sm:$0xff] %vm439_vm4, %v421_v12  ;;  %427 = vperm.xlu0 %2209, %v421_v12  }
 0x1c1   : > { %v423_v40 = vmul.f32 1.442695, %v422_v13 }
 0x1c3   : > { %2211 = vset.pattern.permute.xlu0 %v2337_v36 }
 0x1c6   : > { %v602_v38 = vld [vmem:[#allocation2] sm:$0xff] }
 0x23e   : > { %v428_v15 = vpop.permute.xlu0 %427 }
 0x23f   : > { %v430_v16 = vsub.f32 %v413_v6, %v428_v15 }
 0x241   : > { %v431_v17 = vmul.f32 1.442695, %v430_v16 }
 0x243   : > { %2218 = vpow2.f32 %v431_v17 }
 0x244   : > { %2220 = vpow2.f32 %v423_v40 }
 0x24d   : > { %v2492_v20 = vpop.eup %2218 }
 0x24e   : > { %2098 = vmatmul.mubr.msk.f32.vlgmr.msra.gmra.mrb[0].mxu1 %vm340_vm2, %v2492_v20  ;;  %v2521_v47 = vpop.eup %2220  ;;  %v435_v52 = vsel %vm340_vm2, %v2492_v20, 0.0 }
 0x24f   : > { %2101 = vmatpush3.xpose.msk.msra.mxu1 %vm340_vm2, %v527_v14  ;;  %2102 = vmatprep.mubr.msk.f32.mxu1 %vm2331_vm3, %v2330_v5 }
 0x250   : > { %2110 = vmatprep.subr.mxu1 %v2330_v5 }
 0x252   : > { %2103 = vmatmul.mubr.msk.f32.vlgmr.msra.gmra.mrb[2].mxu1 %vm340_vm2, %v525_v18 }
 0x253   : > { %2111 = vmatpush3.xpose.msk.msra.mxu1 %vm340_vm2, %v717_v19  ;;  %2112 = vmatprep.mubr.msk.f32.mxu1 %vm2331_vm3, %v2330_v5 }
 0x254   : > { %2120 = vmatprep.subr.mxu1 %v2330_v5 }
 0x256   : > { %2113 = vmatmul.mubr.msk.f32.vlgmr.msra.gmra.mrb[4].mxu1 %vm340_vm2, %v715_v21  ;;  %v433_v21 = vld [vmem:[#allocation3] sm:$0xff] }
 0x257   : > { %2121 = vmatpush3.xpose.msk.msra.mxu1 %vm340_vm2, %v906_v22  ;;  %2122 = vmatprep.mubr.msk.f32.mxu1 %vm2331_vm3, %v2330_v5  ;;  %v434_v22 = vmul.f32 %v2521_v47, %v433_v21 }
 0x25a   : > { %2123 = vmatmul.mubr.msk.f32.vlgmr.msra.gmra.mrb[6].mxu1 %vm340_vm2, %v904_v23 }
 0x321   : > { %v2510_v24 = vpop.f32.mrb[0].mxu1 }
 0x322   : > { %v2099_v25 = vpop.f32.mrb[1].mxu1 }
 0x325   : > { %v598_v26 = vpop.f32.mrb[2].mxu1 }
 0x326   : > { %v2104_v27 = vpop.f32.mrb[3].mxu1  ;;  %v603_v28 = vsel %vm340_vm2, %v598_v26, -inf }
 0x327   : > { %604 = vmax.xlane.f32.xlu1 %v603_v28 }
 0x329   : > { %v788_v29 = vpop.f32.mrb[4].mxu1 }
 0x32a   : > { %v2114_v30 = vpop.f32.mrb[5].mxu1  ;;  %v793_v31 = vsel %vm340_vm2, %v788_v29, -inf }
 0x32b   : > { %794 = vmax.xlane.f32.xlu0 %v793_v31 }
 0x32d   : > { %v2514_v32 = vpop.f32.mrb[6].mxu1 }
 0x32e   : > { %v2124_v33 = vpop.f32.mrb[7].mxu1  ;;  %v982_v34 = vsel %vm340_vm2, %v2514_v32, -inf }
 0x32f   : > { %983 = vmax.xlane.f32.xlu1 %v982_v34 }
 0x3b4   : > { %v605_v37 = vpop.xlane.xlu1 %604 }
 0x3b5   : > { %v606_v39 = vmax.f32 %v602_v38, %v605_v37  ;;  %v627_v37 = vld [vmem:[#allocation4 + $0x8] sm:$0xff] }
 0x3b7   : > { %v607_v41 = vsub.f32 %v602_v38, %v606_v39  ;;  %713 = vst.msk [vmem:[#allocation2] sm:$0xff] %vm624_vm5, %v606_v39  ;;  %612 = vperm.xlu1 %2210, %v606_v39   ;;  %v817_v39 = vld [vmem:[#allocation4 + $0x10] sm:$0xff] }
 0x3b8   : > { %v795_v43 = vpop.xlane.xlu0 %794 }
 0x3b9   : > { %v608_v53 = vmul.f32 1.442695, %v607_v41 }
 0x3bb   : > { %2212 = vset.pattern.permute.xlu1 %v2338_v42  ;;  %2222 = vpow2.f32 %v608_v53 }
 0x3bc   : > { %v984_v48 = vpop.xlane.xlu1 %983 }
 0x3be   : > { %v792_v44 = vld [vmem:[#allocation2] sm:$0xff] }
 0x3bf   : > { %v796_v45 = vmax.f32 %v792_v44, %v795_v43 }
 0x3c1   : > { %v797_v46 = vsub.f32 %v792_v44, %v796_v45  ;;  %902 = vst.msk [vmem:[#allocation2] sm:$0xff] %vm814_vm6, %v796_v45  ;;  %802 = vperm.xlu0 %2211, %v796_v45  }
 0x3c3   : > { %v798_v10 = vmul.f32 1.442695, %v797_v46 }
 0x3c5   : > { %2213 = vset.pattern.permute.xlu0 %v2332_v9  ;;  %v2223_v54 = vpop.eup %2222 }
 0x3c6   : > { %444 = vperm.xlu0 %2213, %v2521_v47  }
 0x3c8   : > { %v981_v49 = vld [vmem:[#allocation2] sm:$0xff] }
 0x3c9   : > { %v985_v50 = vmax.f32 %v981_v49, %v984_v48  ;;  %v1006_v48 = vld [vmem:[#allocation4 + $0x18] sm:$0xff] }
 0x3ca   : > { %2215 = vset.pattern.permute.xlu0 %v2337_v36 }
 0x3cb   : > { %v986_v51 = vsub.f32 %v981_v49, %v985_v50  ;;  %1091 = vst.msk [vmem:[#allocation2] sm:$0xff] %vm1003_vm7, %v985_v50  ;;  %991 = vperm.xlu1 %2212, %v985_v50  }
 0x3cd   : > { %v987_v19 = vmul.f32 1.442695, %v986_v51 }
 0x3cf   : > { %635 = vrot.lane.b32.xlu1 %v2454_v4, %s2333_s26 }
 0x3d0   : > { %2214 = vset.pattern.permute.xlu1 %v2336_v35 }
 0x3d3   : > { %824 = vrot.lane.b32.xlu1 %v2454_v4, %s2334_s8 }
 0x3d7   : > { %1013 = vrot.lane.b32.xlu1 %v2454_v4, %s2335_s0 }
 0x3fb   : > { %436 = vadd.xlane.f32.xlu1 %v435_v52 }
 0x40c   : > { %630 = vperm.xlu1 %2214, %v2223_v54  }
 0x410   : > { %2216 = vset.pattern.permute.xlu1 %v2338_v42 }
 0x436   : > { %v613_v55 = vpop.permute.xlu1 %612 }
 0x437   : > { %v615_v56 = vsub.f32 %v598_v26, %v613_v55 }
 0x439   : > { %v616_v57 = vmul.f32 1.442695, %v615_v56 }
 0x43b   : > { %2224 = vpow2.f32 %v616_v57 }
 0x440   : > { %v803_v58 = vpop.permute.xlu0 %802 }
 0x441   : > { %v805_v59 = vsub.f32 %v788_v29, %v803_v58 }
 0x443   : > { %v806_v60 = vmul.f32 1.442695, %v805_v59 }
 0x445   : > { %v2225_v62 = vpop.eup %2224  ;;  %2226 = vpow2.f32 %v806_v60  ;;  %v445_v63 = vpop.permute.xlu0 %444 }
 0x446   : > { %v447_v0 = vmul.f32 %v445_v63, %v441_v61  ;;  %v620_v1 = vsel %vm340_vm2, %v2225_v62, 0.0 }
 0x447   : > { %621 = vadd.xlane.f32.xlu0 %v620_v1 }
 0x448   : > { %v521_v6 = vadd.f32 %v2510_v24, %v447_v0 }
 0x44a   : > { %522 = vst.msk [vmem:[#allocation4] sm:$0xff] %vm340_vm2, %v521_v6  ;;  %v992_v7 = vpop.permute.xlu1 %991 }
 0x44b   : > { %v994_v8 = vsub.f32 %v2514_v32, %v992_v7 }
 0x44d   : > { %v995_v9 = vmul.f32 1.442695, %v994_v8 }
 0x44e   : > { %v636_v11 = vpop.permute.xlu1 %635 }
 0x44f   : > { %v2227_v12 = vpop.eup %2226  ;;  %2228 = vpow2.f32 %v995_v9  ;;  %2106 = vmatpush3.msra.mxu0 %v636_v11 }
 0x450   : > { %2108 = vmatmul.mubr.msk.f32.vlgmr.msra.gmra.mrb[2].mxu0 %vm340_vm2, %v2225_v62  ;;  %v810_v13 = vsel %vm340_vm2, %v2227_v12, 0.0  ;;  %2115 = vmatprep.subr.mxu0 %v2330_v5  ;;  %2230 = vpow2.f32 %v798_v10 }
 0x451   : > { %811 = vadd.xlane.f32.xlu1 %v810_v13  ;;  %2117 = vmatprep.mubr.msk.f32.mxu0 %vm2331_vm3, %v2330_v5  ;;  %2232 = vpow2.f32 %v987_v19 }
 0x452   : > { %v825_v14 = vpop.permute.xlu1 %824 }
 0x453   : > { %2116 = vmatpush3.msra.mxu0 %v825_v14 }
 0x454   : > { %2118 = vmatmul.mubr.msk.f32.vlgmr.msra.gmra.mrb[4].mxu0 %vm340_vm2, %v2227_v12  ;;  %2125 = vmatprep.subr.mxu0 %v2330_v5 }
 0x455   : > { %2127 = vmatprep.mubr.msk.f32.mxu0 %vm2331_vm3, %v2330_v5 }
 0x456   : > { %v1014_v15 = vpop.permute.xlu1 %1013 }
 0x457   : > { %2126 = vmatpush3.msra.mxu0 %v1014_v15 }
 0x459   : > { %v2229_v16 = vpop.eup %2228 }
 0x45a   : > { %2128 = vmatmul.mubr.msk.f32.vlgmr.msra.gmra.mrb[6].mxu0 %vm340_vm2, %v2229_v16  ;;  %v999_v17 = vsel %vm340_vm2, %v2229_v16, 0.0  ;;  %v2231_v18 = vpop.eup %2230 }
 0x45b   : > { %1000 = vadd.xlane.f32.xlu1 %v999_v17  ;;  %v2233_v20 = vpop.eup %2232 }
 0x45d   : > { %820 = vperm.xlu0 %2215, %v2231_v18  }
 0x461   : > { %2217 = vset.pattern.permute.xlu0 %v2338_v42 }
 0x46c   : > { %1009 = vperm.xlu1 %2216, %v2233_v20  }
 0x488   : > { %v437_v5 = vpop.xlane.xlu1 %436 }
 0x489   : > { %v438_v23 = vadd.f32 %v437_v5, %v434_v22 }
 0x48b   : > { %440 = vst.msk [vmem:[#allocation3] sm:$0xff] %vm439_vm4, %v438_v23 }
 0x48c   : > { %v631_v28 = vpop.permute.xlu1 %630 }
 0x48d   : > { %v633_v38 = vmul.f32 %v631_v28, %v627_v37 }
 0x492   : > { %v618_v24 = vld [vmem:[#allocation3] sm:$0xff] }
 0x493   : > { %v619_v25 = vmul.f32 %v2223_v54, %v618_v24 }
 0x4d4   : > { %v622_v26 = vpop.xlane.xlu0 %621 }
 0x4d5   : > { %v623_v27 = vadd.f32 %v622_v26, %v619_v25 }
 0x4d7   : > { %625 = vst.msk [vmem:[#allocation3] sm:$0xff] %vm624_vm5, %v623_v27 }
 0x4dc   : > { %v821_v40 = vpop.permute.xlu0 %820 }
 0x4dd   : > { %v823_v44 = vmul.f32 %v821_v40, %v817_v39 }
 0x4de   : > { %v808_v29 = vld [vmem:[#allocation3] sm:$0xff]  ;;  %v812_v31 = vpop.xlane.xlu1 %811 }
 0x4df   : > { %v809_v30 = vmul.f32 %v2231_v18, %v808_v29 }
 0x4e1   : > { %v813_v32 = vadd.f32 %v812_v31, %v809_v30 }
 0x4e3   : > { %815 = vst.msk [vmem:[#allocation3] sm:$0xff] %vm814_vm6, %v813_v32 }
 0x4e8   : > { %v1001_v35 = vpop.xlane.xlu1 %1000 }
 0x4ea   : > { %v997_v33 = vld [vmem:[#allocation3] sm:$0xff] }
 0x4eb   : > { %v998_v34 = vmul.f32 %v2233_v20, %v997_v33 }
 0x4ec   : > { %v1010_v49 = vpop.permute.xlu1 %1009 }
 0x4ed   : > { %v1002_v36 = vadd.f32 %v1001_v35, %v998_v34  ;;  %v1012_v50 = vmul.f32 %v1010_v49, %v1006_v48 }
 0x4ef   : > { %1004 = vst.msk [vmem:[#allocation3] sm:$0xff] %vm1003_vm7, %v1002_v36 }
 0x523   : > { %v707_v41 = vpop.f32.mrb[2].mxu0 }
 0x524   : > { %v711_v42 = vadd.f32 %v707_v41, %v633_v38  ;;  %v2109_v43 = vpop.f32.mrb[3].mxu0 }
 0x526   : > { %712 = vst.msk [vmem:[#allocation4 + $0x8] sm:$0xff] %vm340_vm2, %v711_v42 }
 0x527   : > { %v896_v45 = vpop.f32.mrb[4].mxu0 }
 0x528   : > { %v900_v46 = vadd.f32 %v896_v45, %v823_v44  ;;  %v2119_v47 = vpop.f32.mrb[5].mxu0 }
 0x52a   : > { %901 = vst.msk [vmem:[#allocation4 + $0x10] sm:$0xff] %vm340_vm2, %v900_v46 }
 0x52d   : > { %v1085_v51 = vpop.f32.mrb[6].mxu0 }
 0x52e   : > { %v1089_v52 = vadd.f32 %v1085_v51, %v1012_v50  ;;  %v2129_v53 = vpop.f32.mrb[7].mxu0 }
 0x530   : > { %1090 = vst.msk [vmem:[#allocation4 + $0x18] sm:$0xff] %vm340_vm2, %v1089_v52 }
 0x531 PF: > { %p2042_p5 = scmp.le.s32.totalorder %s2458_s25, %s2428_s12 }
 0x532   : > { %vm1105_vm8 = vcmask (!%p2042_p5), 64512   ;;  %v2339_v54 = vmov (!%p2042_p5), 0.0   ;;  %vm2340_vm9 = vmmov (!%p2042_p5), 0   ;;  %v1096_v55 = vlaneseq (!%p2042_p5)  ;;  %s2342_s1 = smov (!%p2042_p5), 120   ;;  %s2343_s10 = smov (!%p2042_p5), 112   ;;  %v1183_v7 = vld [vmem:[#allocation2] sm:$0xff] (!%p2042_p5) }
 0x533   : > { %1095 = sbr.rel (%p2042_p5) target bundleno = 2576 (0xa10), region = 44  ;;  %2130 = vmatprep.subr.mxu0 (!%p2042_p5), %v2339_v54  ;;  %2132 = vmatprep.mubr.msk.f32.mxu0 (!%p2042_p5), %vm2340_vm9, %v2339_v54  ;;  %v1098_v58 = vstv (!%p2042_p5), %s2428_s12  ;;  %v1102_v59 = vstv (!%p2042_p5), %s2027_s16  ;;  %v2341_v6 = vmov (!%p2042_p5), 0   ;;  %s2344_s11 = smov (!%p2042_p5), 104   ;;  %vm1205_vm11 = vcmask (!%p2042_p5), 7168  }
 0x534   : > { %2131 = vmatpush3.xpose.msk.msra.mxu0 (!%p2042_p5), %vm1105_vm8, %v2452_v3  ;;  %2135 = vmatprep.subr.mxu1 (!%p2042_p5), %v2339_v54  ;;  %v1097_v56 = vshrl.u32 (!%p2042_p5), %v1096_v55, 7  ;;  %v1101_v57 = vand.u32 (!%p2042_p5), 127, %v1096_v55  ;;  %v2345_v32 = vmov (!%p2042_p5), 1   ;;  %v2346_v33 = vmov (!%p2042_p5), 2  }
 0x535   : > { %2136 = vmatpush3.msra.mxu1 (!%p2042_p5), %v2454_v4  ;;  %2137 = vmatprep.mubr.msk.f32.mxu1 (!%p2042_p5), %vm2340_vm9, %v2339_v54  ;;  %vm1391_vm12 = vcmask (!%p2042_p5), 15368   ;;  %v2347_v39 = vmov (!%p2042_p5), 3   ;;  %vm1582_vm13 = vcmask (!%p2042_p5), 23568   ;;  %vm1772_vm14 = vcmask (!%p2042_p5), 31768  }
 0x536   : > { %2140 = vmatprep.subr.mxu1 (!%p2042_p5), %v2339_v54  ;;  %2145 = vmatprep.subr.mxu0 (!%p2042_p5), %v2339_v54  ;;  %v2579_v60 = vadd.s32 (!%p2042_p5), %v1098_v58, %v1097_v56  ;;  %v1103_v61 = vadd.s32 (!%p2042_p5), %v1102_v59, %v1101_v57  ;;  %v1207_v59 = vld [vmem:[#allocation4] sm:$0xff] (!%p2042_p5) }
 0x537   : > { %2133 = vmatmul.mubr.msk.f32.vlgmr.msra.gmra.mrb[0].mxu0 (!%p2042_p5), %vm1105_vm8, %v2450_v2  ;;  %2234 = vset.pattern.permute.xlu0 (!%p2042_p5), %v2341_v6 }
 0x538   : > { %2147 = vmatprep.mubr.msk.f32.mxu0 (!%p2042_p5), %vm2340_vm9, %v2339_v54  ;;  %vm1104_vm10 = vcmp.le.s32.totalorder (!%p2042_p5), %v1103_v61, %v2579_v60  ;;  %1292 = vrot.lane.b32.xlu1 (!%p2042_p5), %v2452_v3, %s2342_s1 }
 0x539   : > { %2235 = vset.pattern.permute.xlu1 (!%p2042_p5), %v2345_v32 }
 0x53c   : > { %1290 = vrot.lane.b32.xlu1 %v2450_v2, %s2342_s1 }
 0x540   : > { %1483 = vrot.lane.b32.xlu1 %v2452_v3, %s2343_s10 }
 0x544   : > { %1481 = vrot.lane.b32.xlu1 %v2450_v2, %s2343_s10 }
 0x548   : > { %1673 = vrot.lane.b32.xlu1 %v2452_v3, %s2344_s11 }
 0x54c   : > { %1671 = vrot.lane.b32.xlu1 %v2450_v2, %s2344_s11 }
 0x5aa   : > { %v1293_v11 = vpop.permute.xlu1 %1292 }
 0x5ae   : > { %v1291_v15 = vpop.permute.xlu1 %1290 }
 0x5b2   : > { %v1484_v16 = vpop.permute.xlu1 %1483 }
 0x5b6   : > { %v1482_v3 = vpop.permute.xlu1 %1481 }
 0x5ba   : > { %v1674_v2 = vpop.permute.xlu1 %1673 }
 0x5be   : > { %v1672_v18 = vpop.permute.xlu1 %1671 }
 0x60a   : > { %v1178_v62 = vpop.f32.mrb[0].mxu0 }
 0x60b   : > { %v1182_v63 = vsel %vm1104_vm10, %v1178_v62, -1e+30  ;;  %v2134_v0 = vpop.f32.mrb[1].mxu0 }
 0x60c   : > { %v1184_v1 = vsel %vm1105_vm8, %v1182_v63, -inf }
 0x60d   : > { %1185 = vmax.xlane.f32.xlu0 %v1184_v1 }
 0x69a   : > { %v1186_v8 = vpop.xlane.xlu0 %1185 }
 0x69b   : > { %v1187_v9 = vmax.f32 %v1183_v7, %v1186_v8 }
 0x69d   : > { %v1188_v10 = vsub.f32 %v1183_v7, %v1187_v9  ;;  %1289 = vst.msk [vmem:[#allocation2] sm:$0xff] %vm1205_vm11, %v1187_v9  ;;  %1193 = vperm.xlu0 %2234, %v1187_v9  }
 0x69f   : > { %v1189_v37 = vmul.f32 1.442695, %v1188_v10 }
 0x6a1   : > { %2236 = vset.pattern.permute.xlu0 %v2346_v33 }
 0x6a4   : > { %v1369_v35 = vld [vmem:[#allocation2] sm:$0xff] }
 0x71c   : > { %v1194_v12 = vpop.permute.xlu0 %1193 }
 0x71d   : > { %v1196_v13 = vsub.f32 %v1182_v63, %v1194_v12 }
 0x71f   : > { %v1197_v14 = vmul.f32 1.442695, %v1196_v13 }
 0x721   : > { %2243 = vpow2.f32 %v1197_v14 }
 0x722   : > { %2245 = vpow2.f32 %v1189_v37 }
 0x72b   : > { %v2599_v17 = vpop.eup %2243 }
 0x72c   : > { %2138 = vmatmul.mubr.msk.f32.vlgmr.msra.gmra.mrb[0].mxu1 %vm1105_vm8, %v2599_v17  ;;  %v2634_v44 = vpop.eup %2245  ;;  %v1201_v49 = vsel %vm1105_vm8, %v2599_v17, 0.0 }
 0x72d   : > { %2141 = vmatpush3.xpose.msk.msra.mxu1 %vm1105_vm8, %v1293_v11  ;;  %2142 = vmatprep.mubr.msk.f32.mxu1 %vm2340_vm9, %v2339_v54 }
 0x72e   : > { %2150 = vmatprep.subr.mxu1 %v2339_v54 }
 0x730   : > { %2143 = vmatmul.mubr.msk.f32.vlgmr.msra.gmra.mrb[2].mxu1 %vm1105_vm8, %v1291_v15 }
 0x731   : > { %2151 = vmatpush3.xpose.msk.msra.mxu1 %vm1105_vm8, %v1484_v16  ;;  %2152 = vmatprep.mubr.msk.f32.mxu1 %vm2340_vm9, %v2339_v54 }
 0x732   : > { %2160 = vmatprep.subr.mxu1 %v2339_v54 }
 0x734   : > { %2153 = vmatmul.mubr.msk.f32.vlgmr.msra.gmra.mrb[4].mxu1 %vm1105_vm8, %v1482_v3  ;;  %v1199_v3 = vld [vmem:[#allocation3] sm:$0xff] }
 0x735   : > { %2161 = vmatpush3.xpose.msk.msra.mxu1 %vm1105_vm8, %v1674_v2  ;;  %2162 = vmatprep.mubr.msk.f32.mxu1 %vm2340_vm9, %v2339_v54  ;;  %v1200_v2 = vmul.f32 %v2634_v44, %v1199_v3 }
 0x738   : > { %2163 = vmatmul.mubr.msk.f32.vlgmr.msra.gmra.mrb[6].mxu1 %vm1105_vm8, %v1672_v18 }
 0x7ff   : > { %v2617_v19 = vpop.f32.mrb[0].mxu1 }
 0x800   : > { %v2139_v20 = vpop.f32.mrb[1].mxu1 }
 0x803   : > { %v1364_v21 = vpop.f32.mrb[2].mxu1 }
 0x804   : > { %v1368_v22 = vsel %vm1104_vm10, %v1364_v21, -1e+30  ;;  %v2144_v5 = vpop.f32.mrb[3].mxu1 }
 0x805   : > { %v1370_v23 = vsel %vm1105_vm8, %v1368_v22, -inf }
 0x806   : > { %1371 = vmax.xlane.f32.xlu1 %v1370_v23 }
 0x807   : > { %v1555_v24 = vpop.f32.mrb[4].mxu1 }
 0x808   : > { %v1559_v25 = vsel %vm1104_vm10, %v1555_v24, -1e+30  ;;  %v2154_v26 = vpop.f32.mrb[5].mxu1 }
 0x809   : > { %v1561_v27 = vsel %vm1105_vm8, %v1559_v25, -inf }
 0x80a   : > { %1562 = vmax.xlane.f32.xlu0 %v1561_v27 }
 0x80b   : > { %v1745_v28 = vpop.f32.mrb[6].mxu1 }
 0x80c   : > { %v2627_v29 = vsel %vm1104_vm10, %v1745_v28, -1e+30  ;;  %v2164_v30 = vpop.f32.mrb[7].mxu1 }
 0x80d   : > { %v1751_v31 = vsel %vm1105_vm8, %v2627_v29, -inf }
 0x80e   : > { %1752 = vmax.xlane.f32.xlu1 %v1751_v31  ;;  %v1394_v31 = vld [vmem:[#allocation4 + $0x8] sm:$0xff] }
 0x893   : > { %v1372_v34 = vpop.xlane.xlu1 %1371 }
 0x894   : > { %v1373_v36 = vmax.f32 %v1369_v35, %v1372_v34 }
 0x896   : > { %v1374_v38 = vsub.f32 %v1369_v35, %v1373_v36  ;;  %1480 = vst.msk [vmem:[#allocation2] sm:$0xff] %vm1391_vm12, %v1373_v36  ;;  %1379 = vperm.xlu1 %2235, %v1373_v36  }
 0x897   : > { %v1563_v40 = vpop.xlane.xlu0 %1562 }
 0x898   : > { %v1375_v50 = vmul.f32 1.442695, %v1374_v38 }
 0x89a   : > { %2237 = vset.pattern.permute.xlu1 %v2347_v39  ;;  %2247 = vpow2.f32 %v1375_v50 }
 0x89b   : > { %v1753_v45 = vpop.xlane.xlu1 %1752 }
 0x89d   : > { %v1560_v41 = vld [vmem:[#allocation2] sm:$0xff] }
 0x89e   : > { %v1564_v42 = vmax.f32 %v1560_v41, %v1563_v40 }
 0x8a0   : > { %v1565_v43 = vsub.f32 %v1560_v41, %v1564_v42  ;;  %1670 = vst.msk [vmem:[#allocation2] sm:$0xff] %vm1582_vm13, %v1564_v42  ;;  %1570 = vperm.xlu0 %2236, %v1564_v42   ;;  %v1775_v42 = vld [vmem:[#allocation4 + $0x18] sm:$0xff] }
 0x8a2   : > { %v1566_v7 = vmul.f32 1.442695, %v1565_v43 }
 0x8a4   : > { %2238 = vset.pattern.permute.xlu0 %v2341_v6  ;;  %v2248_v51 = vpop.eup %2247 }
 0x8a5   : > { %1210 = vperm.xlu0 %2238, %v2634_v44  }
 0x8a7   : > { %v1750_v46 = vld [vmem:[#allocation2] sm:$0xff] }
 0x8a8   : > { %v1754_v47 = vmax.f32 %v1750_v46, %v1753_v45 }
 0x8a9   : > { %2240 = vset.pattern.permute.xlu0 %v2346_v33  ;;  %v1585_v33 = vld [vmem:[#allocation4 + $0x10] sm:$0xff] }
 0x8aa   : > { %v1755_v48 = vsub.f32 %v1750_v46, %v1754_v47  ;;  %1860 = vst.msk [vmem:[#allocation2] sm:$0xff] %vm1772_vm14, %v1754_v47  ;;  %1760 = vperm.xlu1 %2237, %v1754_v47  }
 0x8ac   : > { %v1756_v16 = vmul.f32 1.442695, %v1755_v48 }
 0x8ae   : > { %1402 = vrot.lane.b32.xlu1 %v2454_v4, %s2342_s1 }
 0x8af   : > { %2239 = vset.pattern.permute.xlu1 %v2345_v32 }
 0x8b2   : > { %1592 = vrot.lane.b32.xlu1 %v2454_v4, %s2343_s10 }
 0x8b6   : > { %1782 = vrot.lane.b32.xlu1 %v2454_v4, %s2344_s11 }
 0x8da   : > { %1202 = vadd.xlane.f32.xlu1 %v1201_v49 }
 0x8eb   : > { %1397 = vperm.xlu1 %2239, %v2248_v51  }
 0x8ef   : > { %2241 = vset.pattern.permute.xlu1 %v2347_v39 }
 0x915   : > { %v1380_v52 = vpop.permute.xlu1 %1379 }
 0x916   : > { %v1382_v53 = vsub.f32 %v1368_v22, %v1380_v52 }
 0x918   : > { %v1383_v55 = vmul.f32 1.442695, %v1382_v53 }
 0x91a   : > { %2249 = vpow2.f32 %v1383_v55 }
 0x91f   : > { %v1571_v56 = vpop.permute.xlu0 %1570 }
 0x920   : > { %v1573_v57 = vsub.f32 %v1559_v25, %v1571_v56 }
 0x922   : > { %v1574_v58 = vmul.f32 1.442695, %v1573_v57 }
 0x924   : > { %v2250_v60 = vpop.eup %2249  ;;  %2251 = vpow2.f32 %v1574_v58  ;;  %v1211_v4 = vpop.permute.xlu0 %1210 }
 0x925   : > { %v1213_v61 = vmul.f32 %v1211_v4, %v1207_v59  ;;  %v1387_v62 = vsel %vm1105_vm8, %v2250_v60, 0.0 }
 0x926   : > { %1388 = vadd.xlane.f32.xlu0 %v1387_v62 }
 0x927   : > { %v1287_v63 = vadd.f32 %v2617_v19, %v1213_v61 }
 0x929   : > { %1288 = vst.msk [vmem:[#allocation4] sm:$0xff] %vm1105_vm8, %v1287_v63  ;;  %v1761_v0 = vpop.permute.xlu1 %1760 }
 0x92a   : > { %v1763_v1 = vsub.f32 %v2627_v29, %v1761_v0 }
 0x92c   : > { %v1764_v6 = vmul.f32 1.442695, %v1763_v1 }
 0x92d   : > { %v1403_v8 = vpop.permute.xlu1 %1402 }
 0x92e   : > { %v2252_v9 = vpop.eup %2251  ;;  %2253 = vpow2.f32 %v1764_v6  ;;  %2146 = vmatpush3.msra.mxu0 %v1403_v8 }
 0x92f   : > { %2148 = vmatmul.mubr.msk.f32.vlgmr.msra.gmra.mrb[2].mxu0 %vm1105_vm8, %v2250_v60  ;;  %v1578_v10 = vsel %vm1105_vm8, %v2252_v9, 0.0  ;;  %2155 = vmatprep.subr.mxu0 %v2339_v54  ;;  %2255 = vpow2.f32 %v1566_v7 }
 0x930   : > { %1579 = vadd.xlane.f32.xlu1 %v1578_v10  ;;  %2157 = vmatprep.mubr.msk.f32.mxu0 %vm2340_vm9, %v2339_v54  ;;  %2257 = vpow2.f32 %v1756_v16 }
 0x931   : > { %v1593_v11 = vpop.permute.xlu1 %1592 }
 0x932   : > { %2156 = vmatpush3.msra.mxu0 %v1593_v11 }
 0x933   : > { %2158 = vmatmul.mubr.msk.f32.vlgmr.msra.gmra.mrb[4].mxu0 %vm1105_vm8, %v2252_v9  ;;  %2165 = vmatprep.subr.mxu0 %v2339_v54 }
 0x934   : > { %2167 = vmatprep.mubr.msk.f32.mxu0 %vm2340_vm9, %v2339_v54 }
 0x935   : > { %v1783_v12 = vpop.permute.xlu1 %1782 }
 0x936   : > { %2166 = vmatpush3.msra.mxu0 %v1783_v12 }
 0x938   : > { %v2254_v13 = vpop.eup %2253 }
 0x939   : > { %2168 = vmatmul.mubr.msk.f32.vlgmr.msra.gmra.mrb[6].mxu0 %vm1105_vm8, %v2254_v13  ;;  %v1768_v14 = vsel %vm1105_vm8, %v2254_v13, 0.0  ;;  %v2256_v15 = vpop.eup %2255 }
 0x93a   : > { %1769 = vadd.xlane.f32.xlu1 %v1768_v14  ;;  %v2258_v17 = vpop.eup %2257 }
 0x93c   : > { %1588 = vperm.xlu0 %2240, %v2256_v15  }
 0x940   : > { %2242 = vset.pattern.permute.xlu0 %v2347_v39 }
 0x94b   : > { %1778 = vperm.xlu1 %2241, %v2258_v17  }
 0x967   : > { %v1203_v54 = vpop.xlane.xlu1 %1202 }
 0x968   : > { %v1204_v18 = vadd.f32 %v1203_v54, %v1200_v2 }
 0x96a   : > { %1206 = vst.msk [vmem:[#allocation3] sm:$0xff] %vm1205_vm11, %v1204_v18 }
 0x96b   : > { %v1398_v5 = vpop.permute.xlu1 %1397 }
 0x96c   : > { %v1400_v32 = vmul.f32 %v1398_v5, %v1394_v31 }
 0x971   : > { %v1385_v19 = vld [vmem:[#allocation3] sm:$0xff] }
 0x972   : > { %v1386_v20 = vmul.f32 %v2248_v51, %v1385_v19 }
 0x9b3   : > { %v1389_v21 = vpop.xlane.xlu0 %1388 }
 0x9b4   : > { %v1390_v22 = vadd.f32 %v1389_v21, %v1386_v20 }
 0x9b6   : > { %1392 = vst.msk [vmem:[#allocation3] sm:$0xff] %vm1391_vm12, %v1390_v22 }
 0x9bb   : > { %v1589_v34 = vpop.permute.xlu0 %1588 }
 0x9bc   : > { %v1591_v38 = vmul.f32 %v1589_v34, %v1585_v33 }
 0x9bd   : > { %v1576_v23 = vld [vmem:[#allocation3] sm:$0xff]  ;;  %v1580_v25 = vpop.xlane.xlu1 %1579 }
 0x9be   : > { %v1577_v24 = vmul.f32 %v2256_v15, %v1576_v23 }
 0x9c0   : > { %v1581_v26 = vadd.f32 %v1580_v25, %v1577_v24 }
 0x9c2   : > { %1583 = vst.msk [vmem:[#allocation3] sm:$0xff] %vm1582_vm13, %v1581_v26 }
 0x9c7   : > { %v1770_v29 = vpop.xlane.xlu1 %1769 }
 0x9c9   : > { %v1766_v27 = vld [vmem:[#allocation3] sm:$0xff] }
 0x9ca   : > { %v1767_v28 = vmul.f32 %v2258_v17, %v1766_v27 }
 0x9cb   : > { %v1779_v43 = vpop.permute.xlu1 %1778 }
 0x9cc   : > { %v1771_v30 = vadd.f32 %v1770_v29, %v1767_v28  ;;  %v1781_v44 = vmul.f32 %v1779_v43, %v1775_v42 }
 0x9ce   : > { %1773 = vst.msk [vmem:[#allocation3] sm:$0xff] %vm1772_vm14, %v1771_v30 }
 0xa02   : > { %v1474_v35 = vpop.f32.mrb[2].mxu0 }
 0xa03   : > { %v1478_v36 = vadd.f32 %v1474_v35, %v1400_v32  ;;  %v2149_v37 = vpop.f32.mrb[3].mxu0 }
 0xa05   : > { %1479 = vst.msk [vmem:[#allocation4 + $0x8] sm:$0xff] %vm1105_vm8, %v1478_v36 }
 0xa06   : > { %v1664_v39 = vpop.f32.mrb[4].mxu0 }
 0xa07   : > { %v1668_v40 = vadd.f32 %v1664_v39, %v1591_v38  ;;  %v2159_v41 = vpop.f32.mrb[5].mxu0 }
 0xa09   : > { %1669 = vst.msk [vmem:[#allocation4 + $0x10] sm:$0xff] %vm1105_vm8, %v1668_v40 }
 0xa0c   : > { %v1854_v45 = vpop.f32.mrb[6].mxu0 }
 0xa0d   : > { %v1858_v46 = vadd.f32 %v1854_v45, %v1781_v44  ;;  %v2169_v47 = vpop.f32.mrb[7].mxu0 }
 0xa0f   : > { %1859 = vst.msk [vmem:[#allocation4 + $0x18] sm:$0xff] %vm1105_vm8, %v1858_v46 }
 0xa10 PF: > { %p2055_p6 = scmp.ne.s32.totalorder %s2417_s28, %s2419_s29 }
 0xa11   : > { %v1866_v48 = vld [vmem:[#allocation3] sm:$0xff] (!%p2055_p6)  ;;  %v2348_v49 = vmov (!%p2055_p6), 1   ;;  %v2349_v50 = vmov (!%p2055_p6), 3   ;;  %v2350_v52 = vmov (!%p2055_p6), 2   ;;  %v2351_v53 = vmov (!%p2055_p6), 0   ;;  %v1875_v55 = vld [vmem:[#allocation4 + $0x8] sm:$0xff] (!%p2055_p6) }
 0xa12   : > { %1864 = sbr.rel (%p2055_p6) target bundleno = 2842 (0xb1a), region = 48  ;;  %2259 = vset.pattern.permute.xlu0 (!%p2055_p6), %v2348_v49  ;;  %2264 = vrcp.f32 (!%p2055_p6), %v1866_v48  ;;  %2261 = vset.pattern.permute.xlu1 (!%p2055_p6), %v2349_v50  ;;  %s2352_s28 = smov (!%p2055_p6), 8   ;;  %v1882_v60 = vld [vmem:[#allocation4 + $0x10] sm:$0xff] (!%p2055_p6)  ;;  %v1865_v0 = vld [vmem:[#allocation4] sm:$0xff] (!%p2055_p6)  ;;  %vm1907_vm15 = vcmask (!%p2055_p6), 64512   ;;  %vm1909_vm0 = vcmask (!%p2055_p6), 130048  }
 0xa13   : > { %s2353_s29 = smov (!%p2055_p6), 24   ;;  %s2354_s12 = smov (!%p2055_p6), 16   ;;  %vm1911_vm1 = vcmask (!%p2055_p6), 195584   ;;  %vm1913_vm2 = vcmask (!%p2055_p6), 261120  }
 0xa16   : > { %v1889_v57 = vld [vmem:[#allocation4 + $0x18] sm:$0xff] (!%p2055_p6) }
 0xa1c   : > { %v2265_v51 = vpop.eup %2264 }
 0xa1d   : > { %1877 = vperm.xlu0 %2259, %v2265_v51   ;;  %1891 = vperm.xlu1 %2261, %v2265_v51  }
 0xa21   : > { %2260 = vset.pattern.permute.xlu0 %v2350_v52  ;;  %2262 = vset.pattern.permute.xlu1 %v2351_v53 }
 0xa22   : > { %1884 = vperm.xlu0 %2260, %v2265_v51   ;;  %1870 = vperm.xlu1 %2262, %v2265_v51  }
 0xa26   : > { %2263 = vset.pattern.permute.xlu0 %v2349_v50 }
 0xa9c   : > { %v1878_v56 = vpop.permute.xlu0 %1877  ;;  %v1892_v58 = vpop.permute.xlu1 %1891 }
 0xa9d   : > { %v1880_v59 = vmul.f32 %v1878_v56, %v1875_v55  ;;  %v1894_v4 = vmul.f32 %v1892_v58, %v1889_v57 }
 0xa9f   : > { %1896 = vrot.lane.b32.xlu1 %v1880_v59, %s2352_s28 }
 0xaa1   : > { %v1885_v61 = vpop.permute.xlu0 %1884  ;;  %v1871_v63 = vpop.permute.xlu1 %1870 }
 0xaa2   : > { %v1887_v62 = vmul.f32 %v1885_v61, %v1882_v60  ;;  %v1873_v6 = vmul.f32 %v1871_v63, %v1865_v0 }
 0xaa3   : > { %1904 = vrot.lane.b32.xlu1 %v1894_v4, %s2353_s29 }
 0xaa4   : > { %1900 = vrot.lane.b32.xlu0 %v1887_v62, %s2354_s12 }
 0xb11   : > { %v1897_v1 = vpop.permute.xlu1 %1896 }
 0xb12   : > { %v1908_v8 = vsel %vm1907_vm15, %v1873_v6, %v1897_v1 }
 0xb15   : > { %v1905_v7 = vpop.permute.xlu1 %1904 }
 0xb16   : > { %v1901_v9 = vpop.permute.xlu0 %1900 }
 0xb17   : > { %v1910_v10 = vsel %vm1909_vm0, %v1908_v8, %v1901_v9 }
 0xb18   : > { %v1912_v11 = vsel %vm1911_vm1, %v1910_v10, %v1905_v7 }
 0xb19   : > { %1914 = vst.msk [vmem:[%s312_s9] sm:$0xff] %vm1913_vm2, %v1912_v11 }
 0xb1a PF: > { %s35_s3 = sadd.s32 1, %s2322_s3  }
 0xb1b   : > { %p32_p7 = scmp.ge.s32.totalorder %s35_s3, 4  }
 0xb1d   :  { %34 = sbr.rel (!%p32_p7) target bundleno = 47 (0x2f), region = 93 }

</bundles_post_ra>
